<compile_context>
chip_gen: v7x
topology: tpu7x:2x2x1
jax: 0.10.0
libtpu: 0.0.40
codegen_flags: <defaults>
</compile_context>

<pallas_src>
import jax
import jax.numpy as jnp
import numpy as np
from jax import lax
from jax.experimental import pallas as pl
from jax.experimental.pallas import tpu as pltpu


def _round_up(x: int, m: int) -> int:
    return ((x + m - 1) // m) * m


# ---------------------------------------------------------------------------
# Pallas kernel
# ---------------------------------------------------------------------------
def _make_kernel(steerer_order: int, d_pad: int, b2_actual: int, b2_pad: int):
    R = int(steerer_order)

    def kernel(d1_ref, d2t_ref, w_ref, ratio_ref, idx_ref):
        d1 = d1_ref[...]                       # (tm, Dp)   pre-normalized
        d2t = d2t_ref[...]                     # (Dp, B2p)  pre-normalized, pre-transposed

        # rotation r = 0: cosine similarity (unit-norm on both sides)
        sim = jnp.dot(d1, d2t, preferred_element_type=jnp.float32)   # (tm, B2p) f32

        if R > 1:
            # All steered copies from ONE fused matmul against the original d1
            # (precomputed (G^T)^r powers, concatenated along N).
            steered = jnp.dot(d1, w_ref[...],
                              preferred_element_type=jnp.float32)    # (tm, (R-1)*Dp)
            for r in range(R - 1):
                s_r = steered[:, r * d_pad:(r + 1) * d_pad]           # (tm, Dp) f32
                # re-normalize (generator need not be orthogonal); rsqrt == 1 EUP op
                ss = jnp.sum(s_r * s_r, axis=-1, keepdims=True)
                s_r = s_r * lax.rsqrt(jnp.maximum(ss, 1e-24))
                sim = jnp.maximum(
                    sim,
                    jnp.dot(s_r.astype(d2t.dtype), d2t,
                            preferred_element_type=jnp.float32))

        # SNN top-2 in similarity space (min distance == max similarity).
        col = lax.broadcasted_iota(jnp.int32, sim.shape, 1)
        if b2_pad != b2_actual:
            sim = jnp.where(col < b2_actual, sim, -jnp.inf)   # mask padded columns

        s0 = jnp.max(sim, axis=1, keepdims=True)                              # best
        idx0 = jnp.min(jnp.where(sim == s0, col, b2_pad), axis=1, keepdims=True)
        s1 = jnp.max(jnp.where(col == idx0, -jnp.inf, sim), axis=1, keepdims=True)

        # ratio = dist0/dist1 = sqrt((2-2*s0)/(2-2*s1)); sqrt/div only on (tm,1) scalars
        num = jnp.maximum(1.0 - s0, 0.0)
        den = jnp.maximum(1.0 - s1, 0.0)
        ratio_ref[...] = jnp.sqrt(num / den)
        idx_ref[...] = idx0
        # TODO(synk): lane-dense (1, tm) output stores and a B2-tiled online top-2
        # (flash-style) are deferred; here the store volume is only 8 B/row so the
        # MXU matmuls, not the store path, are the critical slot.

    return kernel


# ---------------------------------------------------------------------------
# Wrapper: one-time preprocessing + tiled pallas_call
# ---------------------------------------------------------------------------
def steered_local_snn_pallas(desc1, desc2, generator, steerer_order,
                             tm: int = 128,
                             operand_dtype=jnp.float32,
                             vmem_limit_bytes: int = 48 * 1024 * 1024):
    """Returns per-row SNN ratio (B1,) and nearest-neighbor index (B1,) int32."""
    B1, D = desc1.shape
    B2, D2 = desc2.shape
    assert D == D2 and generator.shape == (D, D)
    R = int(steerer_order)
    f32 = jnp.float32

    # ---- one-time preprocessing (hoisted out of the kernel) ----
    def l2norm(x):
        ss = jnp.sum(x * x, axis=-1, keepdims=True)
        return x * lax.rsqrt(jnp.maximum(ss, 1e-24))   # == F.normalize(eps=1e-12)

    d1n = l2norm(desc1.astype(f32))
    d2n = l2norm(desc2.astype(f32))

    # TPU-friendly padding
    Dp = _round_up(D, 128)
    B2p = _round_up(B2, 128)
    tm = max(8, min(tm, _round_up(B1, 8)))
    B1p = _round_up(B1, tm)

    if (B1p, Dp) == (B1, D):
        d1p = d1n
    else:
        d1p = jnp.zeros((B1p, Dp), f32).at[:B1, :D].set(d1n)

    d2t = d2n.T                                    # transpose ONCE, outside the kernel
    if (Dp, B2p) == (D, B2):
        d2tp = d2t
    else:
        d2tp = jnp.zeros((Dp, B2p), f32).at[:D, :B2].set(d2t)

    # Precompute steerer powers (G^T)^r, r = 1..R-1, fused into one weight (Dp, (R-1)*Dp).
    g_t = np.asarray(generator, dtype=np.float64).T
    blocks = []
    w = np.eye(D, dtype=np.float64)
    for _ in range(1, R):
        w = w @ g_t
        wp = np.zeros((Dp, Dp), dtype=np.float32)
        wp[:D, :D] = w.astype(np.float32)
        blocks.append(wp)
    if blocks:
        w_cat = jnp.asarray(np.concatenate(blocks, axis=1))
    else:
        w_cat = jnp.zeros((Dp, Dp), f32)           # unused placeholder when R == 1

    # Optional bf16 MXU operands (f32 accumulation); elementwise math stays f32.
    d1p = d1p.astype(operand_dtype)
    d2tp = d2tp.astype(operand_dtype)
    w_cat = w_cat.astype(operand_dtype)

    n_tiles = B1p // tm
    kernel = _make_kernel(R, Dp, B2, B2p)

    ratio, idx = pl.pallas_call(
        kernel,
        out_shape=(
            jax.ShapeDtypeStruct((B1p, 1), jnp.float32),
            jax.ShapeDtypeStruct((B1p, 1), jnp.int32),
        ),
        grid=(n_tiles,),
        in_specs=[
            pl.BlockSpec((tm, Dp), lambda i: (i, 0)),        # desc1 tiles (pipelined)
            pl.BlockSpec((Dp, B2p), lambda i: (0, 0)),       # desc2^T resident
            pl.BlockSpec(w_cat.shape, lambda i: (0, 0)),     # fused steerer weight resident
        ],
        out_specs=(
            pl.BlockSpec((tm, 1), lambda i: (i, 0)),
            pl.BlockSpec((tm, 1), lambda i: (i, 0)),
        ),
        compiler_params=pltpu.CompilerParams(
            dimension_semantics=("parallel",),               # shard B1 tiles across TCs (v7x)
            vmem_limit_bytes=vmem_limit_bytes,
        ),
    )(d1p, d2tp, w_cat)

    return ratio[:B1, 0], idx[:B1, 0]


# ---------------------------------------------------------------------------
# Module-equivalent wrapper (DescriptorMatcherWithSteerer.forward,
# steer_mode="local", match_mode="snn", normalize=True)
# ---------------------------------------------------------------------------
def descriptor_matcher_with_steerer_forward(desc1, desc2, generator,
                                            steerer_order, th, **kwargs):
    B1, B2 = desc1.shape[0], desc2.shape[0]
    if B1 == 0 or B2 < 2:
        # _no_match path
        return (np.empty((0, 1), np.float32), np.empty((0, 2), np.int64), None)

    ratio, idx = steered_local_snn_pallas(desc1, desc2, generator,
                                          steerer_order, **kwargs)
    ratio = np.asarray(jax.block_until_ready(ratio))
    idx = np.asarray(jax.block_until_ready(idx))

    # match_snn tail: dynamic-shape boolean filtering (host-side glue).
    mask = ratio <= th
    match_dists = ratio[mask].reshape(-1, 1).astype(np.float32)
    idxs_in1 = np.arange(B1)[mask]
    matches_idxs = np.stack([idxs_in1, idx[mask]], axis=1).astype(np.int64)
    rot1to2 = None  # local steer mode -> None, as in the PyTorch module
    # TODO(synk): steer_mode="global" (rotation selection / subset_size) and the
    # nn/mnn/smnn match modes are not kernelized here.
    return match_dists, matches_idxs, rot1to2


# ---------------------------------------------------------------------------
# Pure-JAX reference (kornia semantics: serial steering, sqrt'ed distances)
# ---------------------------------------------------------------------------
def _reference(desc1, desc2, generator, steerer_order):
    def l2norm(x):
        return x / jnp.maximum(jnp.linalg.norm(x, axis=-1, keepdims=True), 1e-12)

    d1, d2 = l2norm(desc1), l2norm(desc2)

    def cdist(a, b):
        a_sq = jnp.sum(a * a, -1, keepdims=True)
        b_sq = jnp.sum(b * b, -1)[None, :]
        return jnp.sqrt(jnp.maximum(a_sq + b_sq - 2.0 * a @ b.T, 0.0))

    dm = cdist(d1, d2)
    for _ in range(1, steerer_order):
        d1 = l2norm(d1 @ generator.T)
        dm = jnp.minimum(dm, cdist(d1, d2))

    vals, idxs = jax.lax.top_k(-dm, 2)
    vals = -vals
    ratio = vals[:, 0] / vals[:, 1]
    return np.asarray(ratio), np.asarray(idxs[:, 0]), np.asarray(dm)


if __name__ == "__main__":
    # Small, TPU-friendly shapes.
    B1, B2, D = 128, 128, 128
    steerer_order = 4
    th = 0.8

    key = jax.random.PRNGKey(0)
    k1, k2 = jax.random.split(key)
    desc1 = jax.random.normal(k1, (B1, D), dtype=jnp.float32)
    desc2 = jax.random.normal(k2, (B2, D), dtype=jnp.float32)

    # Deterministic DiscreteSteerer generator: block-diagonal SO(2) rotation
    # by 2*pi/steerer_order (a valid C_n steerer), shape (D, D).
    theta = 2.0 * np.pi / steerer_order
    rot2 = np.array([[np.cos(theta), -np.sin(theta)],
                     [np.sin(theta), np.cos(theta)]], dtype=np.float32)
    generator = jnp.asarray(np.kron(np.eye(D // 2, dtype=np.float32), rot2))

    # Full module-equivalent forward (Pallas hot path + host-side filtering).
    match_dists, matches_idxs, rot1to2 = descriptor_matcher_with_steerer_forward(
        desc1, desc2, generator, steerer_order, th
    )

    # Correctness: f32 kernel vs kornia-style serial reference.
    ratio_k, idx_k = steered_local_snn_pallas(desc1, desc2, generator, steerer_order)
    ratio_k = np.asarray(jax.block_until_ready(ratio_k))
    idx_k = np.asarray(idx_k)
    ratio_ref, idx_ref, dm_ref = _reference(desc1, desc2, generator, steerer_order)

    assert np.allclose(ratio_k, ratio_ref, atol=1e-4), "ratio mismatch"
    mism = idx_k != idx_ref
    if np.any(mism):
        rows = np.where(mism)[0]
        tie_ok = np.abs(dm_ref[rows, idx_k[rows]] - dm_ref[rows, idx_ref[rows]]) < 1e-4
        assert np.all(tie_ok), "nn index mismatch beyond fp near-ties"
    assert match_dists.shape[1] == 1 and matches_idxs.shape[1] == 2
    assert rot1to2 is None

    # bf16-operand MXU fast path (v6e/v7x) — f32 accumulation, looser tolerance.
    ratio_b, _ = steered_local_snn_pallas(
        desc1, desc2, generator, steerer_order, operand_dtype=jnp.bfloat16)
    ratio_b = np.asarray(jax.block_until_ready(ratio_b))
    assert np.all(np.isfinite(ratio_b)), "bf16 ratio not finite"
    assert np.allclose(ratio_b, ratio_ref, atol=5e-2), "bf16 ratio far from f32 reference"

    print("KERNEL_OK")
</pallas_src>

<mosaic_0001>
module attributes {stable_mosaic.version = 11 : i64} {
  func.func @kernel(%arg0: i32, %arg1: memref<128x128xf32, #tpu.memory_space<vmem>>, %arg2: memref<128x128xf32, #tpu.memory_space<vmem>>, %arg3: memref<128x384xf32, #tpu.memory_space<vmem>>, %arg4: memref<128x1xf32, #tpu.memory_space<vmem>>, %arg5: memref<128x1xi32, #tpu.memory_space<vmem>>) attributes {dimension_semantics = [#tpu.dimension_semantics<parallel>], iteration_bounds = array<i64: 1>, scalar_prefetch = 0 : i64, scratch_operands = 0 : i64, tpu.core_type = #tpu.core_type<tc>, window_params = [{transform_indices = @transform_0, window_bounds = array<i64: 128, 128>}, {pipeline_mode = #tpu.pipeline_mode<synchronous>, transform_indices = @transform_1, window_bounds = array<i64: 128, 128>}, {pipeline_mode = #tpu.pipeline_mode<synchronous>, transform_indices = @transform_2, window_bounds = array<i64: 128, 384>}, {transform_indices = @transform_3, window_bounds = array<i64: 128, 1>}, {transform_indices = @transform_4, window_bounds = array<i64: 128, 1>}]} {
    %c0 = arith.constant 0 : index
    %c0_0 = arith.constant 0 : index
    %0 = vector.load %arg1[%c0, %c0_0] : memref<128x128xf32, #tpu.memory_space<vmem>>, vector<128x128xf32>
    %c0_1 = arith.constant 0 : index
    %c0_2 = arith.constant 0 : index
    %1 = vector.load %arg2[%c0_1, %c0_2] : memref<128x128xf32, #tpu.memory_space<vmem>>, vector<128x128xf32>
    %cst = arith.constant dense<0.000000e+00> : vector<128x128xf32>
    %2 = tpu.matmul %0, %1, %cst {dimension_numbers = #tpu.dot_dimension_numbers<[1], [0], [0], [1], [0, 0, 1, 1], [], []>} : vector<128x128xf32>, vector<128x128xf32>, vector<128x128xf32> -> vector<128x128xf32>
    %c0_3 = arith.constant 0 : index
    %c0_4 = arith.constant 0 : index
    %3 = vector.load %arg3[%c0_3, %c0_4] : memref<128x384xf32, #tpu.memory_space<vmem>>, vector<128x384xf32>
    %cst_5 = arith.constant dense<0.000000e+00> : vector<128x384xf32>
    %4 = tpu.matmul %0, %3, %cst_5 {dimension_numbers = #tpu.dot_dimension_numbers<[1], [0], [0], [1], [0, 0, 1, 1], [], []>} : vector<128x128xf32>, vector<128x384xf32>, vector<128x384xf32> -> vector<128x384xf32>
    %5 = vector.extract_strided_slice %4 {offsets = [0, 0], sizes = [128, 128], strides = [1, 1]} : vector<128x384xf32> to vector<128x128xf32>
    %6 = arith.mulf %5, %5 : vector<128x128xf32>
    %cst_6 = arith.constant dense<0.000000e+00> : vector<128xf32>
    %7 = vector.multi_reduction <add>, %6, %cst_6 [1] : vector<128x128xf32> to vector<128xf32>
    %8 = vector.shape_cast %7 : vector<128xf32> to vector<128x1xf32>
    %cst_7 = arith.constant 1.000000e-24 : f32
    %9 = vector.broadcast %cst_7 : f32 to vector<128x1xf32>
    %10 = arith.maximumf %8, %9 : vector<128x1xf32>
    %11 = math.rsqrt %10 : vector<128x1xf32>
    %12 = vector.broadcast %11 : vector<128x1xf32> to vector<128x128xf32>
    %13 = arith.mulf %5, %12 : vector<128x128xf32>
    %cst_8 = arith.constant dense<0.000000e+00> : vector<128x128xf32>
    %14 = tpu.matmul %13, %1, %cst_8 {dimension_numbers = #tpu.dot_dimension_numbers<[1], [0], [0], [1], [0, 0, 1, 1], [], []>} : vector<128x128xf32>, vector<128x128xf32>, vector<128x128xf32> -> vector<128x128xf32>
    %15 = arith.maximumf %2, %14 : vector<128x128xf32>
    %16 = vector.extract_strided_slice %4 {offsets = [0, 128], sizes = [128, 128], strides = [1, 1]} : vector<128x384xf32> to vector<128x128xf32>
    %17 = arith.mulf %16, %16 : vector<128x128xf32>
    %cst_9 = arith.constant dense<0.000000e+00> : vector<128xf32>
    %18 = vector.multi_reduction <add>, %17, %cst_9 [1] : vector<128x128xf32> to vector<128xf32>
    %19 = vector.shape_cast %18 : vector<128xf32> to vector<128x1xf32>
    %cst_10 = arith.constant 1.000000e-24 : f32
    %20 = vector.broadcast %cst_10 : f32 to vector<128x1xf32>
    %21 = arith.maximumf %19, %20 : vector<128x1xf32>
    %22 = math.rsqrt %21 : vector<128x1xf32>
    %23 = vector.broadcast %22 : vector<128x1xf32> to vector<128x128xf32>
    %24 = arith.mulf %16, %23 : vector<128x128xf32>
    %cst_11 = arith.constant dense<0.000000e+00> : vector<128x128xf32>
    %25 = tpu.matmul %24, %1, %cst_11 {dimension_numbers = #tpu.dot_dimension_numbers<[1], [0], [0], [1], [0, 0, 1, 1], [], []>} : vector<128x128xf32>, vector<128x128xf32>, vector<128x128xf32> -> vector<128x128xf32>
    %26 = arith.maximumf %15, %25 : vector<128x128xf32>
    %27 = vector.extract_strided_slice %4 {offsets = [0, 256], sizes = [128, 128], strides = [1, 1]} : vector<128x384xf32> to vector<128x128xf32>
    %28 = arith.mulf %27, %27 : vector<128x128xf32>
    %cst_12 = arith.constant dense<0.000000e+00> : vector<128xf32>
    %29 = vector.multi_reduction <add>, %28, %cst_12 [1] : vector<128x128xf32> to vector<128xf32>
    %30 = vector.shape_cast %29 : vector<128xf32> to vector<128x1xf32>
    %cst_13 = arith.constant 1.000000e-24 : f32
    %31 = vector.broadcast %cst_13 : f32 to vector<128x1xf32>
    %32 = arith.maximumf %30, %31 : vector<128x1xf32>
    %33 = math.rsqrt %32 : vector<128x1xf32>
    %34 = vector.broadcast %33 : vector<128x1xf32> to vector<128x128xf32>
    %35 = arith.mulf %27, %34 : vector<128x128xf32>
    %cst_14 = arith.constant dense<0.000000e+00> : vector<128x128xf32>
    %36 = tpu.matmul %35, %1, %cst_14 {dimension_numbers = #tpu.dot_dimension_numbers<[1], [0], [0], [1], [0, 0, 1, 1], [], []>} : vector<128x128xf32>, vector<128x128xf32>, vector<128x128xf32> -> vector<128x128xf32>
    %37 = arith.maximumf %26, %36 : vector<128x128xf32>
    %38 = tpu.iota {dimensions = array<i32: 1>} : vector<128x128xi32>
    %cst_15 = arith.constant dense<0xFF800000> : vector<128xf32>
    %39 = vector.multi_reduction <maximumf>, %37, %cst_15 [1] : vector<128x128xf32> to vector<128xf32>
    %40 = vector.shape_cast %39 : vector<128xf32> to vector<128x1xf32>
    %41 = vector.broadcast %40 : vector<128x1xf32> to vector<128x128xf32>
    %42 = arith.cmpf oeq, %37, %41 : vector<128x128xf32>
    %c128_i32 = arith.constant 128 : i32
    %43 = vector.broadcast %c128_i32 : i32 to vector<128x128xi32>
    %44 = arith.select %42, %38, %43 : vector<128x128xi1>, vector<128x128xi32>
    %cst_16 = arith.constant dense<2147483647> : vector<128xi32>
    %45 = vector.multi_reduction <minsi>, %44, %cst_16 [1] : vector<128x128xi32> to vector<128xi32>
    %46 = vector.shape_cast %45 : vector<128xi32> to vector<128x1xi32>
    %47 = vector.broadcast %46 : vector<128x1xi32> to vector<128x128xi32>
    %48 = arith.cmpi eq, %38, %47 : vector<128x128xi32>
    %cst_17 = arith.constant 0xFF800000 : f32
    %49 = vector.broadcast %cst_17 : f32 to vector<128x128xf32>
    %50 = arith.select %48, %49, %37 : vector<128x128xi1>, vector<128x128xf32>
    %cst_18 = arith.constant dense<0xFF800000> : vector<128xf32>
    %51 = vector.multi_reduction <maximumf>, %50, %cst_18 [1] : vector<128x128xf32> to vector<128xf32>
    %52 = vector.shape_cast %51 : vector<128xf32> to vector<128x1xf32>
    %cst_19 = arith.constant 1.000000e+00 : f32
    %53 = vector.broadcast %cst_19 : f32 to vector<128x1xf32>
    %54 = arith.subf %53, %40 : vector<128x1xf32>
    %cst_20 = arith.constant 0.000000e+00 : f32
    %55 = vector.broadcast %cst_20 : f32 to vector<128x1xf32>
    %56 = arith.maximumf %54, %55 : vector<128x1xf32>
    %cst_21 = arith.constant 1.000000e+00 : f32
    %57 = vector.broadcast %cst_21 : f32 to vector<128x1xf32>
    %58 = arith.subf %57, %52 : vector<128x1xf32>
    %cst_22 = arith.constant 0.000000e+00 : f32
    %59 = vector.broadcast %cst_22 : f32 to vector<128x1xf32>
    %60 = arith.maximumf %58, %59 : vector<128x1xf32>
    %61 = arith.divf %56, %60 : vector<128x1xf32>
    %62 = math.sqrt %61 : vector<128x1xf32>
    %c0_23 = arith.constant 0 : index
    %c0_24 = arith.constant 0 : index
    %63 = vector.load %arg4[%c0_23, %c0_24] : memref<128x1xf32, #tpu.memory_space<vmem>>, vector<128x1xf32>
    tpu.vector_store %arg4[%c0_23, %c0_24], %62 {strides = array<i32>} : memref<128x1xf32, #tpu.memory_space<vmem>>, vector<128x1xf32>,
    %c0_25 = arith.constant 0 : index
    %c0_26 = arith.constant 0 : index
    %64 = vector.load %arg5[%c0_25, %c0_26] : memref<128x1xi32, #tpu.memory_space<vmem>>, vector<128x1xi32>
    tpu.vector_store %arg5[%c0_25, %c0_26], %46 {strides = array<i32>} : memref<128x1xi32, #tpu.memory_space<vmem>>, vector<128x1xi32>,
    return
  }
  func.func @transform_0(%arg0: i32) -> (i32, i32) {
    %c0_i32 = arith.constant 0 : i32
    %c0_i32_0 = arith.constant 0 : i32
    return %arg0, %c0_i32 : i32, i32
  }
  func.func @transform_1(%arg0: i32) -> (i32, i32) {
    %c0_i32 = arith.constant 0 : i32
    %c0_i32_0 = arith.constant 0 : i32
    %c0_i32_1 = arith.constant 0 : i32
    return %c0_i32, %c0_i32_0 : i32, i32
  }
  func.func @transform_2(%arg0: i32) -> (i32, i32) {
    %c0_i32 = arith.constant 0 : i32
    %c0_i32_0 = arith.constant 0 : i32
    %c0_i32_1 = arith.constant 0 : i32
    return %c0_i32, %c0_i32_0 : i32, i32
  }
  func.func @transform_3(%arg0: i32) -> (i32, i32) {
    %c0_i32 = arith.constant 0 : i32
    %c0_i32_0 = arith.constant 0 : i32
    return %arg0, %c0_i32 : i32, i32
  }
  func.func @transform_4(%arg0: i32) -> (i32, i32) {
    %c0_i32 = arith.constant 0 : i32
    %c0_i32_0 = arith.constant 0 : i32
    return %arg0, %c0_i32 : i32, i32
  }
}

</mosaic_0001>

<bundles_post_ra>
// kernel: tpu_custom_call.1
= control target key start
LH: loop header
LB: loop body
LE: loop exit
PB: predicated region body
PF: predicated region fallthrough
CT: control target
= control target key end

     0   :  { %10 = vsyncpa [#allocation3], 0  ;;  %s4047_s0 = inlined_call_operand.hbm [shape: f32[128,128], index: 0, kind: input, shape index: {}]   ;;  %s4048_s1 = inlined_call_operand.hbm [shape: f32[128,128], index: 1, kind: input, shape index: {}]   ;;  %s4049_s2 = inlined_call_operand.hbm [shape: f32[128,384], index: 2, kind: input, shape index: {}]   ;;  %s4050_s3 = inlined_call_operand.vmem [shape: f32[128,1], index: 3, kind: output, shape index: {0}]   ;;  %s4051_s4 = inlined_call_operand.vmem [shape: s32[128,1], index: 4, kind: output, shape index: {1}]  }
   0x1   :  { %11 = vsyncpa [#allocation5], 0  ;;  %s2850_s15 = smov [#allocation4]   ;;  %s2851_s17 = smov [#allocation2]  }
   0x2   :  { %s29_s16 = sshll.u32 %s2850_s15, 4  ;;  %s17_s18 = sshll.u32 %s2851_s17, 4  ;;  %s30_s16 = int_to_ptr.vmem [resolvable:$true] %s29_s16  ;;  %s2883_s18 = int_to_ptr.vmem [resolvable:$true] %s17_s18 }
   0x3   :  { %s2780_s21 = scalar_lea.hbm %s4048_s1, 2048 }
   0x4   :  { %p2781_p0 = scmp.ne.s32.totalorder %s4048_s1, %s2780_s21  ;;  %p2784_p1 = scmp.lt.u32.totalorder %s2780_s21, %s4048_s1 }
   0x6   :  { %p2786_p2 = pnand %p2784_p1, %p2781_p0 }
   0x8   :  { %2789 = shalt.err (!%p2786_p2)
}
   0x9   :  { %s2790_s26 = scalar_lea.vmem %s30_s16, 2048  ;;  %p2795_p4 = scmp.lt.s32.totalorder %s30_s16, %s30_s16 }
   0xa   :  { %p2791_p3 = scmp.ne.s32.totalorder %s30_s16, %s2790_s26  ;;  %p2796_p5 = scmp.lt.s32.totalorder %s2790_s26, %s2790_s26 }
   0xc   :  { %p2797_p6 = por %p2796_p5, %p2795_p4 }
   0xe   :  { %p2798_p7 = pnand %p2797_p6, %p2791_p3 }
  0x10   :  { %2801 = shalt.err (!%p2798_p7)
}
  0x11   :  { %s2852_s27 = smov 128   ;;  %s2853_s28 = smov 8  }
  0x12   :  { %35 = dma.hbm_to_vmem [thread:$0]  %s4048_s1, 2048, %s30_s16, [#allocation5], %s2852_s27, %s2852_s27, %s2853_s28  }
  0x13   :  { %s2802_s7 = scalar_lea.hbm %s4047_s0, 2048 }
  0x14   :  { %p2803_p8 = scmp.ne.s32.totalorder %s4047_s0, %s2802_s7  ;;  %p2806_p9 = scmp.lt.u32.totalorder %s2802_s7, %s4047_s0 }
  0x16   :  { %p2808_p10 = pnand %p2806_p9, %p2803_p8 }
  0x18   :  { %2811 = shalt.err (!%p2808_p10)
}
  0x19   :  { %s2812_s12 = scalar_lea.vmem %s2883_s18, 2048  ;;  %p2817_p12 = scmp.lt.s32.totalorder %s2883_s18, %s2883_s18 }
  0x1a   :  { %p2813_p11 = scmp.ne.s32.totalorder %s2883_s18, %s2812_s12  ;;  %p2818_p13 = scmp.lt.s32.totalorder %s2812_s12, %s2812_s12 }
  0x1c   :  { %p2819_p0 = por %p2818_p13, %p2817_p12 }
  0x1e   :  { %p2820_p1 = pnand %p2819_p0, %p2813_p11 }
  0x20   :  { %2823 = shalt.err (!%p2820_p1)
}
  0x21   :  { %23 = dma.hbm_to_vmem [thread:$0]  %s4047_s0, 2048, %s2883_s18, [#allocation3], %s2852_s27, %s2852_s27, %s2853_s28  }
  0x22   :  { %s2854_s14 = smov [#allocation6]   ;;  %s2824_s19 = scalar_lea.hbm %s4049_s2, 6144 }
  0x23   :  { %s41_s15 = sshll.u32 %s2854_s14, 4  ;;  %p2825_p2 = scmp.ne.s32.totalorder %s4049_s2, %s2824_s19  ;;  %s42_s15 = int_to_ptr.vmem [resolvable:$true] %s41_s15 }
  0x24   :  { %p2828_p3 = scmp.lt.u32.totalorder %s2824_s19, %s4049_s2 }
  0x26   :  { %p2830_p4 = pnand %p2828_p3, %p2825_p2 }
  0x28   :  { %2833 = shalt.err (!%p2830_p4)
}
  0x29   :  { %s2834_s24 = scalar_lea.vmem %s42_s15, 6144  ;;  %p2839_p6 = scmp.lt.s32.totalorder %s42_s15, %s42_s15 }
  0x2a   :  { %p2835_p5 = scmp.ne.s32.totalorder %s42_s15, %s2834_s24  ;;  %p2840_p7 = scmp.lt.s32.totalorder %s2834_s24, %s2834_s24 }
  0x2c   :  { %p2841_p8 = por %p2840_p7, %p2839_p6 }
  0x2e   :  { %p2842_p9 = pnand %p2841_p8, %p2835_p5 }
  0x30   :  { %2845 = shalt.err (!%p2842_p9)
}
  0x31   :  { %s2855_s0 = smov 384   ;;  %s2856_s18 = smov 24  }
  0x32   :  { %47 = dma.hbm_to_vmem [thread:$0]  %s4049_s2, 6144, %s42_s15, [#allocation5], %s2855_s0, %s2855_s0, %s2856_s18  }
  0x33   :  { %2846 = dma.done.wait [#allocation3], 2048  }
  0x34   :  { %2847 = vsyncadd [#allocation3], 4294965248 }
  0x35   :  { %2848 = dma.done.wait [#allocation5], 8192  }
  0x36   :  { %2849 = vsyncadd [#allocation5], 4294959104  ;;  %v2857_v0 = vmov 0.0   ;;  %v235_v1 = vld [vmem:[#allocation6 + $0x8] sm:$0xff]  ;;  %v238_v2 = vld [vmem:[#allocation6 + $0x20] sm:$0xff] }
  0x37   :  { %346 = vmatprep.mubr.f32.mxu1 %v2857_v0  ;;  %v234_v3 = vld [vmem:[#allocation6] sm:$0xff]  ;;  %v2436_v4 = vpack.c.bf16 %v238_v2, %v235_v1  ;;  %v237_v5 = vld [vmem:[#allocation6 + $0x18] sm:$0xff]  ;;  %v74_v7 = vld [vmem:[#allocation4 + $0x8] sm:$0xff] }
  0x38   :  { %v73_v6 = vld [vmem:[#allocation4] sm:$0xff]  ;;  %v2438_v8 = vpack.c.bf16 %v237_v5, %v234_v3  ;;  %v241_v10 = vld [vmem:[#allocation6 + $0x38] sm:$0xff]  ;;  %v244_v11 = vld [vmem:[#allocation6 + $0x50] sm:$0xff] }
  0x39   :  { %v2927_v9 = vpack.c.bf16 %v74_v7, %v73_v6  ;;  %v240_v12 = vld [vmem:[#allocation6 + $0x30] sm:$0xff]  ;;  %2437 = vmatprep.subr.bf16.mxu1 %v2436_v4  ;;  %v2440_v13 = vpack.c.bf16 %v244_v11, %v241_v10  ;;  %v243_v14 = vld [vmem:[#allocation6 + $0x48] sm:$0xff]  ;;  %v76_v16 = vld [vmem:[#allocation4 + $0x18] sm:$0xff] }
  0x3a   :  { %v75_v15 = vld [vmem:[#allocation4 + $0x10] sm:$0xff]  ;;  %2439 = vmatpush1.bf16.msra.mxu1 %v2438_v8  ;;  %v2442_v17 = vpack.c.bf16 %v243_v14, %v240_v12  ;;  %v247_v19 = vld [vmem:[#allocation6 + $0x68] sm:$0xff]  ;;  %v250_v20 = vld [vmem:[#allocation6 + $0x80] sm:$0xff] }
  0x3b   :  { %2405 = vmatprep.subr.bf16.mxu0 %v2927_v9  ;;  %v2930_v18 = vpack.c.bf16 %v76_v16, %v75_v15  ;;  %v246_v21 = vld [vmem:[#allocation6 + $0x60] sm:$0xff]  ;;  %2441 = vmatprep.subr.bf16.mxu1 %v2440_v13  ;;  %v2444_v22 = vpack.c.bf16 %v250_v20, %v247_v19  ;;  %v249_v23 = vld [vmem:[#allocation6 + $0x78] sm:$0xff]  ;;  %v78_v25 = vld [vmem:[#allocation4 + $0x28] sm:$0xff] }
  0x3c   :  { %2407 = vmatpush3.bf16.msra.mxu0 %v2927_v9  ;;  %v77_v24 = vld [vmem:[#allocation4 + $0x20] sm:$0xff]  ;;  %v253_v27 = vld [vmem:[#allocation6 + $0x98] sm:$0xff]  ;;  %v256_v28 = vld [vmem:[#allocation6 + $0xb0] sm:$0xff]  ;;  %v2446_v31 = vpack.c.bf16 %v249_v23, %v246_v21 }
  0x3d   :  { %2409 = vmatprep.subr.bf16.mxu0 %v2930_v18  ;;  %v2934_v26 = vpack.c.bf16 %v78_v25, %v77_v24  ;;  %v79_v29 = vld [vmem:[#allocation4 + $0x30] sm:$0xff]  ;;  %v80_v30 = vld [vmem:[#allocation4 + $0x38] sm:$0xff]  ;;  %v2448_v32 = vpack.c.bf16 %v256_v28, %v253_v27  ;;  %v255_v34 = vld [vmem:[#allocation6 + $0xa8] sm:$0xff] }
  0x3e   :  { %2443 = vmatpush1.bf16.msra.mxu1 %v2442_v17  ;;  %v252_v33 = vld [vmem:[#allocation6 + $0x90] sm:$0xff]  ;;  %v2938_v35 = vpack.c.bf16 %v80_v30, %v79_v29  ;;  %v259_v36 = vld [vmem:[#allocation6 + $0xc8] sm:$0xff]  ;;  %v262_v37 = vld [vmem:[#allocation6 + $0xe0] sm:$0xff] }
  0x3f   :  { %2445 = vmatprep.subr.bf16.mxu1 %v2444_v22  ;;  %v81_v38 = vld [vmem:[#allocation4 + $0x40] sm:$0xff]  ;;  %v82_v39 = vld [vmem:[#allocation4 + $0x48] sm:$0xff]  ;;  %v2450_v40 = vpack.c.bf16 %v255_v34, %v252_v33  ;;  %v2452_v41 = vpack.c.bf16 %v262_v37, %v259_v36  ;;  %v261_v43 = vld [vmem:[#allocation6 + $0xd8] sm:$0xff] }
  0x40   :  { %2411 = vmatpush3.bf16.msra.mxu0 %v2930_v18  ;;  %v258_v42 = vld [vmem:[#allocation6 + $0xc0] sm:$0xff]  ;;  %v2942_v44 = vpack.c.bf16 %v82_v39, %v81_v38  ;;  %v265_v45 = vld [vmem:[#allocation6 + $0xf8] sm:$0xff]  ;;  %v268_v46 = vld [vmem:[#allocation6 + $0x110] sm:$0xff] }
  0x41   :  { %2413 = vmatprep.subr.bf16.mxu0 %v2934_v26  ;;  %v83_v47 = vld [vmem:[#allocation4 + $0x50] sm:$0xff]  ;;  %v84_v48 = vld [vmem:[#allocation4 + $0x58] sm:$0xff]  ;;  %v2454_v49 = vpack.c.bf16 %v261_v43, %v258_v42  ;;  %v2456_v50 = vpack.c.bf16 %v268_v46, %v265_v45  ;;  %v267_v52 = vld [vmem:[#allocation6 + $0x108] sm:$0xff] }
  0x42   :  { %2447 = vmatpush1.bf16.msra.mxu1 %v2446_v31  ;;  %v264_v51 = vld [vmem:[#allocation6 + $0xf0] sm:$0xff]  ;;  %v2945_v53 = vld [vmem:[#allocation2] sm:$0xff]  ;;  %v2948_v54 = vpack.c.bf16 %v84_v48, %v83_v47  ;;  %v271_v55 = vld [vmem:[#allocation6 + $0x128] sm:$0xff] }
  0x43   :  { %2449 = vmatprep.subr.bf16.mxu1 %v2448_v32  ;;  %v274_v56 = vld [vmem:[#allocation6 + $0x140] sm:$0xff]  ;;  %2156 = vmatprep.mubr.f32.mxu0 %v2945_v53  ;;  %v86_v58 = vld [vmem:[#allocation4 + $0x68] sm:$0xff]  ;;  %v2458_v59 = vpack.c.bf16 %v267_v52, %v264_v51  ;;  %v273_v62 = vld [vmem:[#allocation6 + $0x138] sm:$0xff] }
  0x44   :  { %2415 = vmatpush3.bf16.msra.mxu0 %v2934_v26  ;;  %v85_v57 = vld [vmem:[#allocation4 + $0x60] sm:$0xff]  ;;  %v2460_v60 = vpack.c.bf16 %v274_v56, %v271_v55  ;;  %v277_v1 = vld [vmem:[#allocation6 + $0x158] sm:$0xff]  ;;  %v280_v2 = vld [vmem:[#allocation6 + $0x170] sm:$0xff] }
  0x45   :  { %2417 = vmatprep.subr.bf16.mxu0 %v2938_v35  ;;  %v270_v61 = vld [vmem:[#allocation6 + $0x120] sm:$0xff]  ;;  %v2953_v63 = vpack.c.bf16 %v86_v58, %v85_v57  ;;  %v87_v3 = vld [vmem:[#allocation4 + $0x70] sm:$0xff]  ;;  %v88_v4 = vld [vmem:[#allocation4 + $0x78] sm:$0xff]  ;;  %v2464_v6 = vpack.c.bf16 %v280_v2, %v277_v1 }
  0x46   :  { %2451 = vmatpush1.bf16.msra.mxu1 %v2450_v40  ;;  %v2462_v5 = vpack.c.bf16 %v273_v62, %v270_v61  ;;  %v276_v7 = vld [vmem:[#allocation6 + $0x150] sm:$0xff]  ;;  %v279_v8 = vld [vmem:[#allocation6 + $0x168] sm:$0xff]  ;;  %v2957_v10 = vpack.c.bf16 %v88_v4, %v87_v3  ;;  %v242_v15 = vld [vmem:[#allocation6 + $0x40] sm:$0xff] }
  0x47   :  { %2453 = vmatprep.subr.bf16.mxu1 %v2452_v41  ;;  %v236_v11 = vld [vmem:[#allocation6 + $0x10] sm:$0xff]  ;;  %v239_v12 = vld [vmem:[#allocation6 + $0x28] sm:$0xff]  ;;  %v2466_v13 = vpack.c.bf16 %v279_v8, %v276_v7  ;;  %v245_v16 = vld [vmem:[#allocation6 + $0x58] sm:$0xff] }
  0x48   :  { %2419 = vmatpush3.bf16.msra.mxu0 %v2938_v35  ;;  %v2468_v14 = vpack.c.bf16 %v239_v12, %v236_v11  ;;  %v2962_v17 = vld [vmem:[#allocation2 + $0x8] sm:$0xff]  ;;  %v2965_v19 = vld [vmem:[#allocation2 + $0x10] sm:$0xff]  ;;  %v2472_v20 = vpack.c.bf16 %v245_v16, %v242_v15  ;;  %v2971_v23 = vld [vmem:[#allocation2 + $0x18] sm:$0xff] }
  0x49   :  { %2421 = vmatprep.subr.bf16.mxu0 %v2942_v44  ;;  %v248_v21 = vld [vmem:[#allocation6 + $0x70] sm:$0xff]  ;;  %v251_v22 = vld [vmem:[#allocation6 + $0x88] sm:$0xff]  ;;  %v2973_v24 = vld [vmem:[#allocation2 + $0x20] sm:$0xff] }
  0x4a   :  { %2455 = vmatpush1.bf16.msra.mxu1 %v2454_v49  ;;  %v2476_v25 = vpack.c.bf16 %v251_v22, %v248_v21  ;;  %v254_v27 = vld [vmem:[#allocation6 + $0xa0] sm:$0xff]  ;;  %v257_v28 = vld [vmem:[#allocation6 + $0xb8] sm:$0xff]  ;;  %v2981_v29 = vld [vmem:[#allocation2 + $0x28] sm:$0xff] }
  0x4b   :  { %2457 = vmatprep.subr.bf16.mxu1 %v2456_v50  ;;  %v2983_v30 = vld [vmem:[#allocation2 + $0x30] sm:$0xff]  ;;  %v2480_v31 = vpack.c.bf16 %v257_v28, %v254_v27  ;;  %v263_v33 = vld [vmem:[#allocation6 + $0xe8] sm:$0xff]  ;;  %v2991_v34 = vld [vmem:[#allocation2 + $0x38] sm:$0xff] }
  0x4c   :  { %2423 = vmatpush3.bf16.msra.mxu0 %v2942_v44  ;;  %v260_v32 = vld [vmem:[#allocation6 + $0xd0] sm:$0xff]  ;;  %v2993_v36 = vld [vmem:[#allocation2 + $0x40] sm:$0xff]  ;;  %v269_v39 = vld [vmem:[#allocation6 + $0x118] sm:$0xff] }
  0x4d   :  { %2425 = vmatprep.subr.bf16.mxu0 %v2948_v54  ;;  %v2484_v37 = vpack.c.bf16 %v263_v33, %v260_v32  ;;  %v266_v38 = vld [vmem:[#allocation6 + $0x100] sm:$0xff]  ;;  %v3001_v40 = vld [vmem:[#allocation2 + $0x48] sm:$0xff]  ;;  %v3003_v41 = vld [vmem:[#allocation2 + $0x50] sm:$0xff] }
  0x4e   :  { %2459 = vmatpush1.bf16.msra.mxu1 %v2458_v59  ;;  %v2488_v42 = vpack.c.bf16 %v269_v39, %v266_v38  ;;  %v272_v43 = vld [vmem:[#allocation6 + $0x130] sm:$0xff]  ;;  %v275_v45 = vld [vmem:[#allocation6 + $0x148] sm:$0xff]  ;;  %v3011_v46 = vld [vmem:[#allocation2 + $0x58] sm:$0xff] }
  0x4f   :  { %2461 = vmatprep.subr.bf16.mxu1 %v2460_v60  ;;  %v3013_v47 = vld [vmem:[#allocation2 + $0x60] sm:$0xff]  ;;  %v2492_v48 = vpack.c.bf16 %v275_v45, %v272_v43  ;;  %v281_v50 = vld [vmem:[#allocation6 + $0x178] sm:$0xff]  ;;  %v70_v51 = vld [vmem:[#allocation2 + $0x68] sm:$0xff] }
  0x50   :  { %2427 = vmatpush3.bf16.msra.mxu0 %v2948_v54  ;;  %v278_v49 = vld [vmem:[#allocation6 + $0x160] sm:$0xff]  ;;  %v71_v52 = vld [vmem:[#allocation2 + $0x70] sm:$0xff]  ;;  %v72_v56 = vld [vmem:[#allocation2 + $0x78] sm:$0xff] }
  0x51   :  { %2429 = vmatprep.subr.bf16.mxu0 %v2953_v63  ;;  %v2496_v55 = vpack.c.bf16 %v281_v50, %v278_v49 }
  0x52   :  { %2463 = vmatpush1.bf16.msra.mxu1 %v2462_v5 }
  0x53   :  { %2465 = vmatprep.subr.bf16.mxu1 %v2464_v6 }
  0x54   :  { %2431 = vmatpush3.bf16.msra.mxu0 %v2953_v63 }
  0x55   :  { %2433 = vmatprep.subr.bf16.mxu0 %v2957_v10 }
  0x56   :  { %2467 = vmatpush1.bf16.msra.mxu1 %v2466_v13 }
  0x57   :  { %2533 = vmatprep.subr.bf16.mxu1 %v2927_v9 }
  0x58   :  { %2435 = vmatpush3.bf16.msra.mxu0 %v2957_v10 }
  0x59   :  { %2469 = vmatprep.subr.bf16.mxu0 %v2468_v14  ;;  %347 = vmatmul.mubr.f32.vlgmr.msra.gmra.mrb[0].mxu1 %v2945_v53 }
  0x5a   :  { %352 = vmatprep.mubr.f32.mxu1 %v2857_v0  ;;  %2535 = vmatpush3.bf16.msra.mxu1 %v2927_v9 }
  0x5b   :  { %2157 = vmatmul.mubr.f32.vlgmr.msra.gmra.mrb[0].mxu0 %v2962_v17  ;;  %2537 = vmatprep.subr.bf16.mxu1 %v2930_v18 }
  0x5c   :  { %2471 = vmatpush3.bf16.msra.mxu0 %v2468_v14  ;;  %2159 = vmatprep.mubr.f32.mxu0 %v2965_v19 }
  0x5d   :  { %2473 = vmatprep.subr.bf16.mxu0 %v2472_v20  ;;  %353 = vmatmul.mubr.f32.gmra.mrb[2].mxu1 %v2962_v17 }
  0x5e   :  { %358 = vmatprep.mubr.f32.mxu1 %v2857_v0  ;;  %2539 = vmatpush3.bf16.msra.mxu1 %v2930_v18 }
  0x5f   :  { %2160 = vmatmul.mubr.f32.gmra.mrb[2].mxu0 %v2971_v23  ;;  %2541 = vmatprep.subr.bf16.mxu1 %v2934_v26 }
  0x60   :  { %2475 = vmatpush3.bf16.msra.mxu0 %v2472_v20  ;;  %2162 = vmatprep.mubr.f32.mxu0 %v2973_v24 }
  0x61   :  { %2477 = vmatprep.subr.bf16.mxu0 %v2476_v25  ;;  %359 = vmatmul.mubr.f32.gmra.mrb[4].mxu1 %v2965_v19 }
  0x62   :  { %364 = vmatprep.mubr.f32.mxu1 %v2857_v0  ;;  %2543 = vmatpush3.bf16.msra.mxu1 %v2934_v26 }
  0x63   :  { %2163 = vmatmul.mubr.f32.gmra.mrb[4].mxu0 %v2981_v29  ;;  %2545 = vmatprep.subr.bf16.mxu1 %v2938_v35 }
  0x64   :  { %2479 = vmatpush3.bf16.msra.mxu0 %v2476_v25  ;;  %2165 = vmatprep.mubr.f32.mxu0 %v2983_v30 }
  0x65   :  { %2481 = vmatprep.subr.bf16.mxu0 %v2480_v31  ;;  %365 = vmatmul.mubr.f32.gmra.mrb[6].mxu1 %v2971_v23 }
  0x66   :  { %370 = vmatprep.mubr.f32.mxu1 %v2857_v0  ;;  %2547 = vmatpush3.bf16.msra.mxu1 %v2938_v35 }
  0x67   :  { %2166 = vmatmul.mubr.f32.gmra.mrb[6].mxu0 %v2991_v34  ;;  %2549 = vmatprep.subr.bf16.mxu1 %v2942_v44 }
  0x68   :  { %2483 = vmatpush3.bf16.msra.mxu0 %v2480_v31  ;;  %2168 = vmatprep.mubr.f32.mxu0 %v2993_v36 }
  0x69   :  { %2485 = vmatprep.subr.bf16.mxu0 %v2484_v37  ;;  %371 = vmatmul.mubr.f32.gmra.mrb[8].mxu1 %v2973_v24 }
  0x6a   :  { %376 = vmatprep.mubr.f32.mxu1 %v2857_v0  ;;  %2551 = vmatpush3.bf16.msra.mxu1 %v2942_v44 }
  0x6b   :  { %2169 = vmatmul.mubr.f32.gmra.mrb[8].mxu0 %v3001_v40  ;;  %2553 = vmatprep.subr.bf16.mxu1 %v2948_v54 }
  0x6c   :  { %2487 = vmatpush3.bf16.msra.mxu0 %v2484_v37  ;;  %2171 = vmatprep.mubr.f32.mxu0 %v3003_v41 }
  0x6d   :  { %2489 = vmatprep.subr.bf16.mxu0 %v2488_v42  ;;  %377 = vmatmul.mubr.f32.gmra.mrb[10].mxu1 %v2981_v29 }
  0x6e   :  { %382 = vmatprep.mubr.f32.mxu1 %v2857_v0  ;;  %2555 = vmatpush3.bf16.msra.mxu1 %v2948_v54 }
  0x6f   :  { %2172 = vmatmul.mubr.f32.gmra.mrb[10].mxu0 %v3011_v46  ;;  %2557 = vmatprep.subr.bf16.mxu1 %v2953_v63 }
  0x70   :  { %2491 = vmatpush3.bf16.msra.mxu0 %v2488_v42  ;;  %2174 = vmatprep.mubr.f32.mxu0 %v3013_v47 }
  0x71   :  { %2493 = vmatprep.subr.bf16.mxu0 %v2492_v48  ;;  %383 = vmatmul.mubr.f32.gmra.mrb[12].mxu1 %v2983_v30 }
  0x72   :  { %388 = vmatprep.mubr.f32.mxu1 %v2857_v0  ;;  %2559 = vmatpush3.bf16.msra.mxu1 %v2953_v63 }
  0x73   :  { %2175 = vmatmul.mubr.f32.gmra.mrb[12].mxu0 %v70_v51  ;;  %2561 = vmatprep.subr.bf16.mxu1 %v2957_v10 }
  0x74   :  { %2495 = vmatpush3.bf16.msra.mxu0 %v2492_v48  ;;  %2177 = vmatprep.mubr.f32.mxu0 %v71_v52 }
  0x75   :  { %2497 = vmatprep.subr.bf16.mxu0 %v2496_v55  ;;  %389 = vmatmul.mubr.f32.gmra.mrb[14].mxu1 %v2991_v34 }
  0x76   :  { %394 = vmatprep.mubr.f32.mxu1 %v2857_v0  ;;  %2563 = vmatpush3.bf16.msra.mxu1 %v2957_v10 }
  0x77   :  { %2178 = vmatmul.mubr.f32.gmra.mrb[14].mxu0 %v72_v56  ;;  %2596 = vmatprep.subr.bf16.mxu1 %v2927_v9 }
  0x78   :  { %2499 = vmatpush3.bf16.msra.mxu0 %v2496_v55  ;;  %2212 = vmatprep.mubr.f32.mxu0 %v2945_v53 }
  0x79   :  { %2501 = vmatprep.subr.bf16.mxu0 %v2927_v9  ;;  %395 = vmatmul.mubr.f32.gmra.mrb[16].mxu1 %v2993_v36 }
  0x7a   :  { %400 = vmatprep.mubr.f32.mxu1 %v2857_v0 }
  0x7b   :  { %2213 = vmatmul.mubr.f32.vlgmr.msra.gmra.mrb[16].mxu0 %v2962_v17 }
  0x7c   :  { %2215 = vmatprep.mubr.f32.mxu0 %v2965_v19  ;;  %2503 = vmatpush3.bf16.msra.mxu0 %v2927_v9 }
  0x7d   :  { %2505 = vmatprep.subr.bf16.mxu0 %v2930_v18  ;;  %401 = vmatmul.mubr.f32.gmra.mrb[18].mxu1 %v3001_v40 }
  0x7e   :  { %406 = vmatprep.mubr.f32.mxu1 %v2857_v0 }
  0x7f   :  { %2216 = vmatmul.mubr.f32.gmra.mrb[18].mxu0 %v2971_v23 }
  0x80   :  { %2218 = vmatprep.mubr.f32.mxu0 %v2973_v24  ;;  %2507 = vmatpush3.bf16.msra.mxu0 %v2930_v18 }
  0x81   :  { %2509 = vmatprep.subr.bf16.mxu0 %v2934_v26  ;;  %407 = vmatmul.mubr.f32.gmra.mrb[20].mxu1 %v3003_v41 }
  0x82   :  { %412 = vmatprep.mubr.f32.mxu1 %v2857_v0 }
  0x83   :  { %2219 = vmatmul.mubr.f32.gmra.mrb[20].mxu0 %v2981_v29 }
  0x84   :  { %2221 = vmatprep.mubr.f32.mxu0 %v2983_v30  ;;  %2511 = vmatpush3.bf16.msra.mxu0 %v2934_v26 }
  0x85   :  { %2513 = vmatprep.subr.bf16.mxu0 %v2938_v35  ;;  %413 = vmatmul.mubr.f32.gmra.mrb[22].mxu1 %v3011_v46 }
  0x86   :  { %418 = vmatprep.mubr.f32.mxu1 %v2857_v0 }
  0x87   :  { %2222 = vmatmul.mubr.f32.gmra.mrb[22].mxu0 %v2991_v34 }
  0x88   :  { %2224 = vmatprep.mubr.f32.mxu0 %v2993_v36  ;;  %2515 = vmatpush3.bf16.msra.mxu0 %v2938_v35 }
  0x89   :  { %2517 = vmatprep.subr.bf16.mxu0 %v2942_v44  ;;  %419 = vmatmul.mubr.f32.gmra.mrb[24].mxu1 %v3013_v47 }
  0x8a   :  { %424 = vmatprep.mubr.f32.mxu1 %v2857_v0 }
  0x8b   :  { %2225 = vmatmul.mubr.f32.gmra.mrb[24].mxu0 %v3001_v40 }
  0x8c   :  { %2227 = vmatprep.mubr.f32.mxu0 %v3003_v41  ;;  %2519 = vmatpush3.bf16.msra.mxu0 %v2942_v44 }
  0x8d   :  { %2521 = vmatprep.subr.bf16.mxu0 %v2948_v54  ;;  %425 = vmatmul.mubr.f32.gmra.mrb[26].mxu1 %v70_v51 }
  0x8e   :  { %430 = vmatprep.mubr.f32.mxu1 %v2857_v0 }
  0x8f   :  { %2228 = vmatmul.mubr.f32.gmra.mrb[26].mxu0 %v3011_v46 }
  0x90   :  { %2230 = vmatprep.mubr.f32.mxu0 %v3013_v47  ;;  %2523 = vmatpush3.bf16.msra.mxu0 %v2948_v54 }
  0x91   :  { %2525 = vmatprep.subr.bf16.mxu0 %v2953_v63  ;;  %431 = vmatmul.mubr.f32.gmra.mrb[28].mxu1 %v71_v52 }
  0x92   :  { %436 = vmatprep.mubr.f32.mxu1 %v2857_v0 }
  0x93   :  { %2231 = vmatmul.mubr.f32.gmra.mrb[28].mxu0 %v70_v51 }
  0x94   :  { %2233 = vmatprep.mubr.f32.mxu0 %v71_v52  ;;  %2527 = vmatpush3.bf16.msra.mxu0 %v2953_v63 }
  0x95   :  { %2529 = vmatprep.subr.bf16.mxu0 %v2957_v10  ;;  %437 = vmatmul.mubr.f32.gmra.mrb[30].mxu1 %v72_v56 }
  0x97   :  { %2234 = vmatmul.mubr.f32.gmra.mrb[30].mxu0 %v72_v56 }
  0x98   :  { %2531 = vmatpush3.bf16.msra.mxu0 %v2957_v10 }
  0x99   :  { %2565 = vmatprep.subr.bf16.mxu0 %v2927_v9 }
 0x12c   :  { %v3073_v53 = vpop.f32.mrb[0].mxu1 }
 0x12d   :  { %v3075_v57 = vpop.f32.mrb[1].mxu1  ;;  %v588_v58 = vmul.f32 %v3073_v53, %v3073_v53 }
 0x12e   :  { %v3079_v0 = vpop.f32.mrb[0].mxu0  ;;  %v845_v62 = vmul.f32 %v3075_v57, %v3075_v57 }
 0x12f   :  { %4074 = vst [vmem:[#allocation9_spill] sm:$0xff] %v3079_v0  ;;  %v3081_v59 = vpop.f32.mrb[1].mxu0  ;;  %604 = vadd.xlane.f32.xlu0 %v588_v58 }
 0x130   :  { %4075 = vst [vmem:[#allocation10_spill] sm:$0xff] %v3081_v59  ;;  %v3083_v60 = vpop.f32.mrb[2].mxu1 }
 0x131   :  { %v3085_v61 = vpop.f32.mrb[3].mxu1  ;;  %v589_v1 = vmul.f32 %v3083_v60, %v3083_v60 }
 0x132   :  { %v3091_v2 = vpop.f32.mrb[2].mxu0  ;;  %v846_v6 = vmul.f32 %v3085_v61, %v3085_v61 }
 0x133   :  { %4076 = vst [vmem:[#allocation11_spill] sm:$0xff] %v3091_v2  ;;  %v3093_v3 = vpop.f32.mrb[3].mxu0  ;;  %861 = vadd.xlane.f32.xlu0 %v845_v62  ;;  %606 = vadd.xlane.f32.xlu1 %v589_v1 }
 0x134   :  { %4077 = vst [vmem:[#allocation12_spill] sm:$0xff] %v3093_v3  ;;  %v3095_v4 = vpop.f32.mrb[4].mxu1 }
 0x135   :  { %v3097_v5 = vpop.f32.mrb[5].mxu1  ;;  %v590_v7 = vmul.f32 %v3095_v4, %v3095_v4 }
 0x136   :  { %v3103_v8 = vpop.f32.mrb[4].mxu0  ;;  %v847_v14 = vmul.f32 %v3097_v5, %v3097_v5 }
 0x137   :  { %4078 = vst [vmem:[#allocation13_spill] sm:$0xff] %v3103_v8  ;;  %v3105_v11 = vpop.f32.mrb[5].mxu0  ;;  %863 = vadd.xlane.f32.xlu1 %v846_v6  ;;  %608 = vadd.xlane.f32.xlu0 %v590_v7 }
 0x138   :  { %4079 = vst [vmem:[#allocation14_spill] sm:$0xff] %v3105_v11  ;;  %v3107_v12 = vpop.f32.mrb[6].mxu1 }
 0x139   :  { %v3109_v13 = vpop.f32.mrb[7].mxu1  ;;  %v591_v15 = vmul.f32 %v3107_v12, %v3107_v12 }
 0x13a   :  { %v3115_v16 = vpop.f32.mrb[6].mxu0  ;;  %v848_v21 = vmul.f32 %v3109_v13, %v3109_v13 }
 0x13b   :  { %4080 = vst [vmem:[#allocation15_spill] sm:$0xff] %v3115_v16  ;;  %v3117_v17 = vpop.f32.mrb[7].mxu0  ;;  %865 = vadd.xlane.f32.xlu1 %v847_v14  ;;  %610 = vadd.xlane.f32.xlu0 %v591_v15 }
 0x13c   :  { %4081 = vst [vmem:[#allocation16_spill] sm:$0xff] %v3117_v17  ;;  %v3119_v19 = vpop.f32.mrb[8].mxu1 }
 0x13d   :  { %v3121_v20 = vpop.f32.mrb[9].mxu1  ;;  %v592_v22 = vmul.f32 %v3119_v19, %v3119_v19 }
 0x13e   :  { %v3127_v23 = vpop.f32.mrb[8].mxu0  ;;  %v849_v28 = vmul.f32 %v3121_v20, %v3121_v20 }
 0x13f   :  { %4082 = vst [vmem:[#allocation17_spill] sm:$0xff] %v3127_v23  ;;  %v3129_v24 = vpop.f32.mrb[9].mxu0  ;;  %867 = vadd.xlane.f32.xlu1 %v848_v21  ;;  %612 = vadd.xlane.f32.xlu0 %v592_v22 }
 0x140   :  { %4083 = vst [vmem:[#allocation18_spill] sm:$0xff] %v3129_v24  ;;  %v3131_v25 = vpop.f32.mrb[10].mxu1 }
 0x141   :  { %v3133_v27 = vpop.f32.mrb[11].mxu1  ;;  %v593_v29 = vmul.f32 %v3131_v25, %v3131_v25 }
 0x142   :  { %v3139_v30 = vpop.f32.mrb[10].mxu0  ;;  %v850_v34 = vmul.f32 %v3133_v27, %v3133_v27 }
 0x143   :  { %4084 = vst [vmem:[#allocation19_spill] sm:$0xff] %v3139_v30  ;;  %v3141_v31 = vpop.f32.mrb[11].mxu0  ;;  %869 = vadd.xlane.f32.xlu1 %v849_v28  ;;  %614 = vadd.xlane.f32.xlu0 %v593_v29 }
 0x144   :  { %4085 = vst [vmem:[#allocation20_spill] sm:$0xff] %v3141_v31  ;;  %v3143_v32 = vpop.f32.mrb[12].mxu1 }
 0x145   :  { %v3145_v33 = vpop.f32.mrb[13].mxu1  ;;  %v594_v36 = vmul.f32 %v3143_v32, %v3143_v32 }
 0x146   :  { %v3151_v37 = vpop.f32.mrb[12].mxu0  ;;  %v851_v41 = vmul.f32 %v3145_v33, %v3145_v33 }
 0x147   :  { %4086 = vst [vmem:[#allocation21_spill] sm:$0xff] %v3151_v37  ;;  %v3153_v38 = vpop.f32.mrb[13].mxu0  ;;  %871 = vadd.xlane.f32.xlu1 %v850_v34  ;;  %616 = vadd.xlane.f32.xlu0 %v594_v36 }
 0x148   :  { %4087 = vst [vmem:[#allocation22_spill] sm:$0xff] %v3153_v38  ;;  %v3155_v39 = vpop.f32.mrb[14].mxu1 }
 0x149   :  { %v3157_v40 = vpop.f32.mrb[15].mxu1  ;;  %v595_v42 = vmul.f32 %v3155_v39, %v3155_v39 }
 0x14a   :  { %v3163_v43 = vpop.f32.mrb[14].mxu0  ;;  %v852_v48 = vmul.f32 %v3157_v40, %v3157_v40 }
 0x14b   :  { %4088 = vst [vmem:[#allocation23_spill] sm:$0xff] %v3163_v43  ;;  %v3165_v45 = vpop.f32.mrb[15].mxu0  ;;  %873 = vadd.xlane.f32.xlu1 %v851_v41  ;;  %618 = vadd.xlane.f32.xlu0 %v595_v42 }
 0x14c   :  { %4089 = vst [vmem:[#allocation24_spill] sm:$0xff] %v3165_v45  ;;  %v3167_v46 = vpop.f32.mrb[16].mxu1 }
 0x14d   :  { %v3169_v47 = vpop.f32.mrb[17].mxu1  ;;  %v596_v49 = vmul.f32 %v3167_v46, %v3167_v46 }
 0x14e   :  { %v3175_v50 = vpop.f32.mrb[16].mxu0  ;;  %v853_v56 = vmul.f32 %v3169_v47, %v3169_v47 }
 0x14f   :  { %v3177_v51 = vpop.f32.mrb[17].mxu0  ;;  %875 = vadd.xlane.f32.xlu1 %v852_v48  ;;  %620 = vadd.xlane.f32.xlu0 %v596_v49  ;;  %v1103_v52 = vmul.f32 %v3175_v50, %v3175_v50 }
 0x150   :  { %v3181_v55 = vpop.f32.mrb[18].mxu1  ;;  %v1102_v15 = vmul.f32 %v3177_v51, %v3177_v51 }
 0x151   :  { %v3185_v58 = vpop.f32.mrb[19].mxu1  ;;  %v597_v36 = vmul.f32 %v3181_v55, %v3181_v55 }
 0x152   :  { %v3187_v62 = vpop.f32.mrb[18].mxu0  ;;  %v854_v6 = vmul.f32 %v3185_v58, %v3185_v58 }
 0x153   :  { %v3189_v1 = vpop.f32.mrb[19].mxu0  ;;  %877 = vadd.xlane.f32.xlu1 %v853_v56  ;;  %1120 = vadd.xlane.f32.xlu0 %v1103_v52  ;;  %v1105_v52 = vmul.f32 %v3187_v62, %v3187_v62 }
 0x154   :  { %v3193_v7 = vpop.f32.mrb[20].mxu1  ;;  %v1104_v45 = vmul.f32 %v3189_v1, %v3189_v1 }
 0x155   :  { %v3195_v14 = vpop.f32.mrb[21].mxu1  ;;  %v598_v31 = vmul.f32 %v3193_v7, %v3193_v7 }
 0x156   :  { %v3199_v21 = vpop.f32.mrb[20].mxu0  ;;  %v855_v28 = vmul.f32 %v3195_v14, %v3195_v14 }
 0x157   :  { %4090 = vst [vmem:[#allocation25_spill] sm:$0xff] %v3199_v21  ;;  %v3201_v22 = vpop.f32.mrb[21].mxu0  ;;  %879 = vadd.xlane.f32.xlu1 %v854_v6  ;;  %1118 = vadd.xlane.f32.xlu0 %v1102_v15 }
 0x158   :  { %v3205_v29 = vpop.f32.mrb[22].mxu1 }
 0x159   :  { %v3207_v34 = vpop.f32.mrb[23].mxu1 }
 0x15a   :  { %v3211_v41 = vpop.f32.mrb[22].mxu0  ;;  %v856_v48 = vmul.f32 %v3207_v34, %v3207_v34 }
 0x15b   :  { %4091 = vst [vmem:[#allocation26_spill] sm:$0xff] %v3211_v41  ;;  %v3213_v42 = vpop.f32.mrb[23].mxu0  ;;  %881 = vadd.xlane.f32.xlu1 %v855_v28  ;;  %622 = vadd.xlane.f32.xlu0 %v597_v36 }
 0x15c   :  { %4092 = vst [vmem:[#allocation27_spill] sm:$0xff] %v3213_v42  ;;  %v3217_v49 = vpop.f32.mrb[24].mxu1 }
 0x15d   :  { %v3223_v6 = vpop.f32.mrb[25].mxu1 }
 0x15e   :  { %v3221_v56 = vpop.f32.mrb[24].mxu0 }
 0x15f   :  { %v3225_v15 = vpop.f32.mrb[25].mxu0  ;;  %883 = vadd.xlane.f32.xlu1 %v856_v48  ;;  %1124 = vadd.xlane.f32.xlu0 %v1105_v52  ;;  %v1111_v28 = vmul.f32 %v3221_v56, %v3221_v56  ;;  %v857_v48 = vmul.f32 %v3223_v6, %v3223_v6 }
 0x160   :  { %v3229_v36 = vpop.f32.mrb[26].mxu1 }
 0x161   :  { %v3235_v38 = vpop.f32.mrb[27].mxu1  ;;  %v601_v3 = vmul.f32 %v3229_v36, %v3229_v36 }
 0x162   :  { %v3233_v43 = vpop.f32.mrb[26].mxu0  ;;  %v858_v2 = vmul.f32 %v3235_v38, %v3235_v38 }
 0x163   :  { %4093 = vst [vmem:[#allocation28_spill] sm:$0xff] %v3233_v43  ;;  %v3237_v37 = vpop.f32.mrb[27].mxu0  ;;  %1122 = vadd.xlane.f32.xlu0 %v1104_v45  ;;  %1136 = vadd.xlane.f32.xlu1 %v1111_v28  ;;  %v599_v45 = vmul.f32 %v3205_v29, %v3205_v29  ;;  %v1110_v28 = vmul.f32 %v3225_v15, %v3225_v15 }
 0x164   :  { %v3241_v52 = vpop.f32.mrb[28].mxu1 }
 0x165   :  { %v3245_v30 = vpop.f32.mrb[29].mxu1 }
 0x166   :  { %v3247_v24 = vpop.f32.mrb[28].mxu0 }
 0x167   :  { %4094 = vst [vmem:[#allocation29_spill] sm:$0xff] %v3247_v24  ;;  %v3249_v23 = vpop.f32.mrb[29].mxu0  ;;  %624 = vadd.xlane.f32.xlu0 %v598_v31  ;;  %885 = vadd.xlane.f32.xlu1 %v857_v48  ;;  %v1113_v31 = vmul.f32 %v3233_v43, %v3233_v43  ;;  %v600_v48 = vmul.f32 %v3217_v49, %v3217_v49 }
 0x168   :  { %4095 = vst [vmem:[#allocation30_spill] sm:$0xff] %v3249_v23  ;;  %v3251_v17 = vpop.f32.mrb[30].mxu1 }
 0x169   :  { %v3257_v16 = vpop.f32.mrb[31].mxu1 }
 0x16a   :  { %v3259_v11 = vpop.f32.mrb[30].mxu0 }
 0x16b   :  { %4096 = vst [vmem:[#allocation31_spill] sm:$0xff] %v3259_v11  ;;  %v3261_v8 = vpop.f32.mrb[31].mxu0  ;;  %626 = vadd.xlane.f32.xlu0 %v599_v45  ;;  %1134 = vadd.xlane.f32.xlu1 %v1110_v28  ;;  %v602_v45 = vmul.f32 %v3241_v52, %v3241_v52  ;;  %v1112_v28 = vmul.f32 %v3237_v37, %v3237_v37 }
 0x16c   :  { %4097 = vst [vmem:[#allocation32_spill] sm:$0xff] %v3261_v8 }
 0x16f   :  { %628 = vadd.xlane.f32.xlu0 %v600_v48  ;;  %1140 = vadd.xlane.f32.xlu1 %v1113_v31  ;;  %v603_v48 = vmul.f32 %v3251_v17, %v3251_v17  ;;  %v859_v31 = vmul.f32 %v3245_v30, %v3245_v30 }
 0x173   :  { %630 = vadd.xlane.f32.xlu0 %v601_v3  ;;  %887 = vadd.xlane.f32.xlu1 %v858_v2  ;;  %v1106_v3 = vmul.f32 %v3201_v22, %v3201_v22  ;;  %v860_v2 = vmul.f32 %v3257_v16, %v3257_v16 }
 0x177   :  { %632 = vadd.xlane.f32.xlu0 %v602_v45  ;;  %1138 = vadd.xlane.f32.xlu1 %v1112_v28  ;;  %v1114_v45 = vmul.f32 %v3249_v23, %v3249_v23  ;;  %v1107_v28 = vmul.f32 %v3199_v21, %v3199_v21 }
 0x17b   :  { %634 = vadd.xlane.f32.xlu0 %v603_v48  ;;  %889 = vadd.xlane.f32.xlu1 %v859_v31  ;;  %v1115_v48 = vmul.f32 %v3247_v24, %v3247_v24  ;;  %v1108_v31 = vmul.f32 %v3213_v42, %v3213_v42 }
 0x17f   :  { %1126 = vadd.xlane.f32.xlu0 %v1106_v3  ;;  %891 = vadd.xlane.f32.xlu1 %v860_v2  ;;  %v1116_v3 = vmul.f32 %v3261_v8, %v3261_v8  ;;  %v1109_v2 = vmul.f32 %v3211_v41, %v3211_v41 }
 0x183   :  { %1128 = vadd.xlane.f32.xlu0 %v1107_v28  ;;  %1142 = vadd.xlane.f32.xlu1 %v1114_v45  ;;  %v1117_v28 = vmul.f32 %v3259_v11, %v3259_v11 }
 0x187   :  { %1130 = vadd.xlane.f32.xlu0 %v1108_v31  ;;  %1144 = vadd.xlane.f32.xlu1 %v1115_v48 }
 0x18b   :  { %1132 = vadd.xlane.f32.xlu0 %v1109_v2  ;;  %1146 = vadd.xlane.f32.xlu1 %v1116_v3 }
 0x18f   :  { %1148 = vadd.xlane.f32.xlu1 %v1117_v28 }
 0x1bc   :  { %v605_v45 = vpop.xlane.xlu0 %604 }
 0x1bd   :  { %v636_v59 = vmax.f32 %v605_v45, 1e-24 }
 0x1bf   :  { %2620 = vrsqrt.f32 %v636_v59 }
 0x1c0   :  { %v862_v0 = vpop.xlane.xlu0 %861  ;;  %v607_v24 = vpop.xlane.xlu1 %606 }
 0x1c1   :  { %v893_v23 = vmax.f32 %v862_v0, 1e-24  ;;  %v637_v31 = vmax.f32 %v607_v24, 1e-24 }
 0x1c3   :  { %2622 = vrsqrt.f32 %v893_v23 }
 0x1c4   :  { %2624 = vrsqrt.f32 %v637_v31  ;;  %v864_v48 = vpop.xlane.xlu1 %863  ;;  %v609_v8 = vpop.xlane.xlu0 %608 }
 0x1c5   :  { %v894_v43 = vmax.f32 %v864_v48, 1e-24  ;;  %v638_v42 = vmax.f32 %v609_v8, 1e-24 }
 0x1c7   :  { %2626 = vrsqrt.f32 %v894_v43 }
 0x1c8   :  { %2628 = vrsqrt.f32 %v638_v42  ;;  %v866_v3 = vpop.xlane.xlu1 %865  ;;  %v611_v2 = vpop.xlane.xlu0 %610 }
 0x1c9   :  { %v2621_v41 = vpop.eup %2620  ;;  %v895_v11 = vmax.f32 %v866_v3, 1e-24  ;;  %v639_v28 = vmax.f32 %v611_v2, 1e-24 }
 0x1ca   :  { %v668_v45 = vmul.f32 %v2621_v41, %v3073_v53 }
 0x1cb   :  { %2630 = vrsqrt.f32 %v895_v11 }
 0x1cc   :  { %2632 = vrsqrt.f32 %v639_v28  ;;  %v868_v59 = vpop.xlane.xlu1 %867  ;;  %v613_v0 = vpop.xlane.xlu0 %612  ;;  %2268 = vmatprep.mubr.f32.mxu0 %v668_v45 }
 0x1cd   :  { %v2623_v23 = vpop.eup %2622  ;;  %v896_v24 = vmax.f32 %v868_v59, 1e-24  ;;  %v640_v31 = vmax.f32 %v613_v0, 1e-24 }
 0x1ce   :  { %v2625_v21 = vpop.eup %2624  ;;  %v925_v8 = vmul.f32 %v2623_v23, %v3075_v57 }
 0x1cf   :  { %2634 = vrsqrt.f32 %v896_v24  ;;  %v669_v43 = vmul.f32 %v2625_v21, %v3083_v60 }
 0x1d0   :  { %2636 = vrsqrt.f32 %v640_v31  ;;  %2324 = vmatprep.mubr.f32.mxu1 %v925_v8  ;;  %v870_v42 = vpop.xlane.xlu1 %869  ;;  %v615_v48 = vpop.xlane.xlu0 %614 }
 0x1d1   :  { %v2627_v3 = vpop.eup %2626  ;;  %v897_v53 = vmax.f32 %v870_v42, 1e-24  ;;  %v641_v11 = vmax.f32 %v615_v48, 1e-24  ;;  %2269 = vmatmul.mubr.f32.vlgmr.msra.gmra.mrb[32].mxu0 %v669_v43 }
 0x1d2   :  { %v2629_v41 = vpop.eup %2628  ;;  %v926_v2 = vmul.f32 %v2627_v3, %v3085_v61  ;;  %2567 = vmatpush3.bf16.msra.mxu0 %v2927_v9 }
 0x1d3   :  { %2638 = vrsqrt.f32 %v897_v53  ;;  %v670_v28 = vmul.f32 %v2629_v41, %v3095_v4  ;;  %2569 = vmatprep.subr.bf16.mxu0 %v2930_v18 }
 0x1d4   :  { %2640 = vrsqrt.f32 %v641_v11  ;;  %2325 = vmatmul.mubr.f32.vlgmr.msra.gmra.mrb[32].mxu1 %v926_v2  ;;  %v872_v57 = vpop.xlane.xlu1 %871  ;;  %v617_v60 = vpop.xlane.xlu0 %616 }
 0x1d5   :  { %v2631_v21 = vpop.eup %2630  ;;  %v898_v45 = vmax.f32 %v872_v57, 1e-24  ;;  %v642_v59 = vmax.f32 %v617_v60, 1e-24  ;;  %2271 = vmatprep.mubr.f32.mxu0 %v670_v28  ;;  %2604 = vmatpush3.bf16.msra.mxu1 %v2927_v9 }
 0x1d6   :  { %v2633_v0 = vpop.eup %2632  ;;  %v927_v61 = vmul.f32 %v2631_v21, %v3097_v5  ;;  %2571 = vmatpush3.bf16.msra.mxu0 %v2930_v18  ;;  %2597 = vmatprep.subr.bf16.mxu1 %v2930_v18 }
 0x1d7   :  { %2642 = vrsqrt.f32 %v898_v45  ;;  %v671_v4 = vmul.f32 %v2633_v0, %v3107_v12  ;;  %2573 = vmatprep.subr.bf16.mxu0 %v2934_v26 }
 0x1d8   :  { %2644 = vrsqrt.f32 %v642_v59  ;;  %2327 = vmatprep.mubr.f32.mxu1 %v927_v61  ;;  %v874_v23 = vpop.xlane.xlu1 %873  ;;  %v619_v24 = vpop.xlane.xlu0 %618 }
 0x1d9   :  { %v2635_v31 = vpop.eup %2634  ;;  %v899_v8 = vmax.f32 %v874_v23, 1e-24  ;;  %v643_v43 = vmax.f32 %v619_v24, 1e-24  ;;  %2272 = vmatmul.mubr.f32.gmra.mrb[34].mxu0 %v671_v4  ;;  %2605 = vmatpush3.bf16.msra.mxu1 %v2930_v18 }
 0x1da   :  { %v2637_v9 = vpop.eup %2636  ;;  %v928_v5 = vmul.f32 %v2635_v31, %v3109_v13  ;;  %2575 = vmatpush3.bf16.msra.mxu0 %v2934_v26  ;;  %2598 = vmatprep.subr.bf16.mxu1 %v2934_v26 }
 0x1db   :  { %2646 = vrsqrt.f32 %v899_v8  ;;  %v672_v12 = vmul.f32 %v2637_v9, %v3119_v19  ;;  %2577 = vmatprep.subr.bf16.mxu0 %v2938_v35 }
 0x1dc   :  { %2648 = vrsqrt.f32 %v643_v43  ;;  %2328 = vmatmul.mubr.f32.gmra.mrb[34].mxu1 %v928_v5  ;;  %v876_v42 = vpop.xlane.xlu1 %875  ;;  %v621_v48 = vpop.xlane.xlu0 %620 }
 0x1dd   :  { %v2639_v3 = vpop.eup %2638  ;;  %v900_v53 = vmax.f32 %v876_v42, 1e-24  ;;  %v644_v11 = vmax.f32 %v621_v48, 1e-24  ;;  %2274 = vmatprep.mubr.f32.mxu0 %v672_v12  ;;  %2606 = vmatpush3.bf16.msra.mxu1 %v2934_v26 }
 0x1de   :  { %v2641_v18 = vpop.eup %2640  ;;  %v929_v13 = vmul.f32 %v2639_v3, %v3121_v20  ;;  %2579 = vmatpush3.bf16.msra.mxu0 %v2938_v35  ;;  %2599 = vmatprep.subr.bf16.mxu1 %v2938_v35 }
 0x1df   :  { %2650 = vrsqrt.f32 %v900_v53  ;;  %v673_v19 = vmul.f32 %v2641_v18, %v3131_v25  ;;  %2581 = vmatprep.subr.bf16.mxu0 %v2942_v44 }
 0x1e0   :  { %2652 = vrsqrt.f32 %v644_v11  ;;  %2330 = vmatprep.mubr.f32.mxu1 %v929_v13  ;;  %v878_v41 = vpop.xlane.xlu1 %877  ;;  %v3322_v2 = vpop.xlane.xlu0 %1120 }
 0x1e1   :  { %v2643_v28 = vpop.eup %2642  ;;  %v901_v57 = vmax.f32 %v878_v41, 1e-24  ;;  %2275 = vmatmul.mubr.f32.gmra.mrb[36].mxu0 %v673_v19  ;;  %2607 = vmatpush3.bf16.msra.mxu1 %v2938_v35 }
 0x1e2   :  { %v2645_v26 = vpop.eup %2644  ;;  %v930_v20 = vmul.f32 %v2643_v28, %v3133_v27  ;;  %2583 = vmatpush3.bf16.msra.mxu0 %v2942_v44  ;;  %2600 = vmatprep.subr.bf16.mxu1 %v2942_v44 }
 0x1e3   :  { %2654 = vrsqrt.f32 %v901_v57  ;;  %v674_v25 = vmul.f32 %v2645_v26, %v3143_v32  ;;  %2585 = vmatprep.subr.bf16.mxu0 %v2948_v54 }
 0x1e4   :  { %2331 = vmatmul.mubr.f32.gmra.mrb[36].mxu1 %v930_v20  ;;  %v880_v60 = vpop.xlane.xlu1 %879  ;;  %v3330_v21 = vpop.xlane.xlu0 %1118 }
 0x1e5   :  { %v2647_v45 = vpop.eup %2646  ;;  %v902_v59 = vmax.f32 %v880_v60, 1e-24  ;;  %2277 = vmatprep.mubr.f32.mxu0 %v674_v25  ;;  %2608 = vmatpush3.bf16.msra.mxu1 %v2942_v44 }
 0x1e6   :  { %v2649_v35 = vpop.eup %2648  ;;  %v931_v27 = vmul.f32 %v2647_v45, %v3145_v33  ;;  %2587 = vmatpush3.bf16.msra.mxu0 %v2948_v54  ;;  %2601 = vmatprep.subr.bf16.mxu1 %v2948_v54 }
 0x1e7   :  { %2656 = vrsqrt.f32 %v902_v59  ;;  %v675_v32 = vmul.f32 %v2649_v35, %v3155_v39  ;;  %2589 = vmatprep.subr.bf16.mxu0 %v2953_v63 }
 0x1e8   :  { %2333 = vmatprep.mubr.f32.mxu1 %v931_v27  ;;  %v882_v0 = vpop.xlane.xlu1 %881  ;;  %v623_v61 = vpop.xlane.xlu0 %622 }
 0x1e9   :  { %v2651_v4 = vpop.eup %2650  ;;  %v903_v23 = vmax.f32 %v882_v0, 1e-24  ;;  %2278 = vmatmul.mubr.f32.gmra.mrb[38].mxu0 %v675_v32  ;;  %v645_v24 = vmax.f32 %v623_v61, 1e-24  ;;  %2609 = vmatpush3.bf16.msra.mxu1 %v2948_v54  ;;  %v1151_v0 = vmax.f32 %v3322_v2, 1e-24 }
 0x1ea   :  { %v2653_v44 = vpop.eup %2652  ;;  %v932_v33 = vmul.f32 %v2651_v4, %v3157_v40  ;;  %2591 = vmatpush3.bf16.msra.mxu0 %v2953_v63  ;;  %2602 = vmatprep.subr.bf16.mxu1 %v2953_v63  ;;  %v1150_v4 = vmax.f32 %v3330_v21, 1e-24 }
 0x1eb   :  { %2658 = vrsqrt.f32 %v903_v23  ;;  %v676_v39 = vmul.f32 %v2653_v44, %v3167_v46  ;;  %2593 = vmatprep.subr.bf16.mxu0 %v2957_v10 }
 0x1ec   :  { %2660 = vrsqrt.f32 %v645_v24  ;;  %2334 = vmatmul.mubr.f32.gmra.mrb[38].mxu1 %v932_v33  ;;  %v884_v31 = vpop.xlane.xlu1 %883  ;;  %v3344_v8 = vpop.xlane.xlu0 %1124 }
 0x1ed   :  { %v2655_v43 = vpop.eup %2654  ;;  %v904_v9 = vmax.f32 %v884_v31, 1e-24  ;;  %2280 = vmatprep.mubr.f32.mxu0 %v676_v39  ;;  %2610 = vmatpush3.bf16.msra.mxu1 %v2953_v63 }
 0x1ee   :  { %v933_v54 = vmul.f32 %v2655_v43, %v3169_v47  ;;  %2595 = vmatpush3.bf16.msra.mxu0 %v2957_v10  ;;  %2603 = vmatprep.subr.bf16.mxu1 %v2957_v10 }
 0x1ef   :  { %2662 = vrsqrt.f32 %v904_v9 }
 0x1f0   :  { %2336 = vmatprep.mubr.f32.mxu1 %v933_v54  ;;  %v3350_v40 = vpop.xlane.xlu0 %1122  ;;  %v3352_v46 = vpop.xlane.xlu1 %1136 }
 0x1f1   :  { %v2657_v5 = vpop.eup %2656  ;;  %2611 = vmatpush3.bf16.msra.mxu1 %v2957_v10  ;;  %v1152_v31 = vmax.f32 %v3350_v40, 1e-24  ;;  %v1159_v54 = vmax.f32 %v3352_v46, 1e-24 }
 0x1f2   :  { %v934_v12 = vmul.f32 %v2657_v5, %v3185_v58 }
 0x1f4   :  { %2337 = vmatmul.mubr.f32.gmra.mrb[40].mxu1 %v934_v12  ;;  %v625_v42 = vpop.xlane.xlu0 %624  ;;  %v886_v63 = vpop.xlane.xlu1 %885 }
 0x1f5   :  { %v2659_v48 = vpop.eup %2658  ;;  %v646_v47 = vmax.f32 %v625_v42, 1e-24  ;;  %v905_v3 = vmax.f32 %v886_v63, 1e-24 }
 0x1f6   :  { %v2661_v53 = vpop.eup %2660  ;;  %v935_v11 = vmul.f32 %v2659_v48, %v3195_v14 }
 0x1f7   :  { %2664 = vrsqrt.f32 %v646_v47  ;;  %v677_v18 = vmul.f32 %v2661_v53, %v3181_v55 }
 0x1f8   :  { %2666 = vrsqrt.f32 %v905_v3  ;;  %2339 = vmatprep.mubr.f32.mxu1 %v935_v11  ;;  %v627_v13 = vpop.xlane.xlu0 %626  ;;  %v1135_v19 = vpop.xlane.xlu1 %1134 }
 0x1f9   :  { %v2663_v41 = vpop.eup %2662  ;;  %2281 = vmatmul.mubr.f32.gmra.mrb[40].mxu0 %v677_v18  ;;  %v647_v10 = vmax.f32 %v627_v13, 1e-24  ;;  %v1158_v43 = vmax.f32 %v1135_v19, 1e-24 }
 0x1fa   :  { %v936_v58 = vmul.f32 %v2663_v41, %v3207_v34 }
 0x1fb   :  { %2668 = vrsqrt.f32 %v647_v10 }
 0x1fc   :  { %2340 = vmatmul.mubr.f32.gmra.mrb[42].mxu1 %v936_v58  ;;  %v629_v28 = vpop.xlane.xlu0 %628  ;;  %v3359_v57 = vpop.xlane.xlu1 %1140 }
 0x1fd   :  { %v648_v26 = vmax.f32 %v629_v28, 1e-24  ;;  %v1161_v63 = vmax.f32 %v3359_v57, 1e-24 }
 0x1ff   :  { %2670 = vrsqrt.f32 %v648_v26 }
 0x200   :  { %v631_v14 = vpop.xlane.xlu0 %630  ;;  %v888_v20 = vpop.xlane.xlu1 %887 }
 0x201   :  { %v2665_v25 = vpop.eup %2664  ;;  %v649_v55 = vmax.f32 %v631_v14, 1e-24  ;;  %v906_v60 = vmax.f32 %v888_v20, 1e-24 }
 0x202   :  { %v2667_v45 = vpop.eup %2666  ;;  %v678_v59 = vmul.f32 %v2665_v25, %v3193_v7 }
 0x203   :  { %2672 = vrsqrt.f32 %v649_v55  ;;  %v937_v35 = vmul.f32 %v2667_v45, %v3223_v6  ;;  %v1153_v6 = vmax.f32 %v3344_v8, 1e-24 }
 0x204   :  { %2674 = vrsqrt.f32 %v906_v60  ;;  %2283 = vmatprep.mubr.f32.mxu0 %v678_v59  ;;  %v633_v34 = vpop.xlane.xlu0 %632  ;;  %v1139_v27 = vpop.xlane.xlu1 %1138 }
 0x205   :  { %v2669_v32 = vpop.eup %2668  ;;  %v650_v61 = vmax.f32 %v633_v34, 1e-24  ;;  %2342 = vmatprep.mubr.f32.mxu1 %v937_v35  ;;  %v1160_v40 = vmax.f32 %v1139_v27, 1e-24 }
 0x206   :  { %v679_v23 = vmul.f32 %v2669_v32, %v3205_v29 }
 0x207   :  { %2676 = vrsqrt.f32 %v650_v61 }
 0x208   :  { %2284 = vmatmul.mubr.f32.gmra.mrb[42].mxu0 %v679_v23  ;;  %v635_v24 = vpop.xlane.xlu0 %634  ;;  %v890_v7 = vpop.xlane.xlu1 %889  ;;  %2678 = vrsqrt.f32 %v1151_v0 }
 0x209   :  { %v2671_v44 = vpop.eup %2670  ;;  %v651_v33 = vmax.f32 %v635_v24, 1e-24  ;;  %v907_v39 = vmax.f32 %v890_v7, 1e-24  ;;  %2680 = vrsqrt.f32 %v1150_v4 }
 0x20a   :  { %v680_v2 = vmul.f32 %v2671_v44, %v3217_v49 }
 0x20b   :  { %2682 = vrsqrt.f32 %v651_v33  ;;  %v4099_v33 = vld [vmem:[#allocation27_spill] sm:$0xff] }
 0x20c   :  { %2684 = vrsqrt.f32 %v907_v39  ;;  %2286 = vmatprep.mubr.f32.mxu0 %v680_v2  ;;  %v1127_v29 = vpop.xlane.xlu0 %1126  ;;  %v892_v21 = vpop.xlane.xlu1 %891 }
 0x20d   :  { %v2673_v9 = vpop.eup %2672  ;;  %2686 = vrsqrt.f32 %v1153_v6  ;;  %v908_v5 = vmax.f32 %v892_v21, 1e-24  ;;  %v1154_v8 = vmax.f32 %v1127_v29, 1e-24 }
 0x20e   :  { %v2675_v12 = vpop.eup %2674  ;;  %2688 = vrsqrt.f32 %v1152_v31  ;;  %v681_v42 = vmul.f32 %v2673_v9, %v3229_v36  ;;  %v4100_v31 = vld [vmem:[#allocation28_spill] sm:$0xff]  ;;  %v4103_v9 = vld [vmem:[#allocation29_spill] sm:$0xff] }
 0x20f   :  { %2690 = vrsqrt.f32 %v1158_v43  ;;  %v938_v49 = vmul.f32 %v2675_v12, %v3235_v38  ;;  %v4101_v43 = vld [vmem:[#allocation30_spill] sm:$0xff] }
 0x210   :  { %2692 = vrsqrt.f32 %v908_v5  ;;  %2287 = vmatmul.mubr.f32.gmra.mrb[44].mxu0 %v681_v42  ;;  %v1129_v48 = vpop.xlane.xlu0 %1128  ;;  %v1143_v47 = vpop.xlane.xlu1 %1142  ;;  %v4104_v5 = vld [vmem:[#allocation32_spill] sm:$0xff]  ;;  %v4105_v42 = vld [vmem:[#allocation31_spill] sm:$0xff] }
 0x211   :  { %v2677_v3 = vpop.eup %2676  ;;  %2694 = vrsqrt.f32 %v1159_v54  ;;  %v1155_v53 = vmax.f32 %v1129_v48, 1e-24  ;;  %2343 = vmatmul.mubr.f32.gmra.mrb[44].mxu1 %v938_v49  ;;  %v1162_v46 = vmax.f32 %v1143_v47, 1e-24 }
 0x212   :  { %2696 = vrsqrt.f32 %v1154_v8  ;;  %v682_v11 = vmul.f32 %v2677_v3, %v3241_v52  ;;  %v2679_v18 = vpop.eup %2678  ;;  %v4107_v3 = vld [vmem:[#allocation10_spill] sm:$0xff] }
 0x213   :  { %2698 = vrsqrt.f32 %v1160_v40  ;;  %v2681_v36 = vpop.eup %2680  ;;  %v1183_v35 = vmul.f32 %v2679_v18, %v3175_v50 }
 0x214   :  { %2700 = vrsqrt.f32 %v1161_v63  ;;  %2289 = vmatprep.mubr.f32.mxu0 %v682_v11  ;;  %v1131_v38 = vpop.xlane.xlu0 %1130  ;;  %v1145_v13 = vpop.xlane.xlu1 %1144  ;;  %v1182_v52 = vmul.f32 %v2681_v36, %v3177_v51  ;;  %v4106_v63 = vld [vmem:[#allocation9_spill] sm:$0xff] }
 0x215   :  { %v2683_v19 = vpop.eup %2682  ;;  %2702 = vrsqrt.f32 %v1155_v53  ;;  %v1156_v41 = vmax.f32 %v1131_v38, 1e-24  ;;  %v1163_v58 = vmax.f32 %v1145_v13, 1e-24  ;;  %v4108_v13 = vld [vmem:[#allocation11_spill] sm:$0xff] }
 0x216   :  { %v2685_v10 = vpop.eup %2684  ;;  %2704 = vrsqrt.f32 %v1162_v46  ;;  %v683_v28 = vmul.f32 %v2683_v19, %v3251_v17 }
 0x217   :  { %v2687_v57 = vpop.eup %2686  ;;  %2706 = vrsqrt.f32 %v1156_v41  ;;  %v939_v26 = vmul.f32 %v2685_v10, %v3245_v30  ;;  %v4109_v10 = vld [vmem:[#allocation12_spill] sm:$0xff] }
 0x218   :  { %v2689_v14 = vpop.eup %2688  ;;  %2290 = vmatmul.mubr.f32.gmra.mrb[46].mxu0 %v683_v28  ;;  %v1133_v20 = vpop.xlane.xlu0 %1132  ;;  %2708 = vrsqrt.f32 %v1163_v58  ;;  %v1185_v50 = vmul.f32 %v2687_v57, %v3187_v62 }
 0x219   :  { %v1147_v25 = vpop.xlane.xlu1 %1146  ;;  %v2691_v55 = vpop.eup %2690  ;;  %v1157_v60 = vmax.f32 %v1133_v20, 1e-24  ;;  %2345 = vmatprep.mubr.f32.mxu1 %v939_v26  ;;  %2380 = vmatprep.mubr.f32.mxu0 %v1182_v52  ;;  %v1184_v30 = vmul.f32 %v2689_v14, %v3189_v1  ;;  %v4110_v20 = vld [vmem:[#allocation13_spill] sm:$0xff] }
 0x21a   :  { %v1164_v45 = vmax.f32 %v1147_v25, 1e-24  ;;  %v2693_v59 = vpop.eup %2692  ;;  %v1190_v32 = vmul.f32 %v2691_v55, %v3225_v15  ;;  %v4098_v15 = vld [vmem:[#allocation25_spill] sm:$0xff] }
 0x21b   :  { %v2695_v17 = vpop.eup %2694  ;;  %2710 = vrsqrt.f32 %v1157_v60  ;;  %v940_v34 = vmul.f32 %v2693_v59, %v3257_v16  ;;  %v4111_v60 = vld [vmem:[#allocation14_spill] sm:$0xff] }
 0x21c   :  { %v2697_v51 = vpop.eup %2696  ;;  %2712 = vrsqrt.f32 %v1164_v45  ;;  %2381 = vmatmul.mubr.f32.vlgmr.msra.gmra.mrb[48].mxu0 %v1183_v35  ;;  %v1191_v16 = vmul.f32 %v2695_v17, %v3221_v56 }
 0x21d   :  { %v1149_v27 = vpop.xlane.xlu1 %1148  ;;  %v2699_v0 = vpop.eup %2698  ;;  %2346 = vmatmul.mubr.f32.gmra.mrb[46].mxu1 %v940_v34  ;;  %2383 = vmatprep.mubr.f32.mxu0 %v1184_v30  ;;  %v1186_v1 = vmul.f32 %v2697_v51, %v3201_v22  ;;  %v4112_v51 = vld [vmem:[#allocation15_spill] sm:$0xff] }
 0x21e   :  { %v1165_v61 = vmax.f32 %v1149_v27, 1e-24  ;;  %v2701_v4 = vpop.eup %2700  ;;  %2392 = vmatprep.mubr.f32.mxu1 %v1190_v32  ;;  %v1192_v7 = vmul.f32 %v2699_v0, %v3237_v37  ;;  %v4102_v37 = vld [vmem:[#allocation26_spill] sm:$0xff]  ;;  %v4113_v0 = vld [vmem:[#allocation16_spill] sm:$0xff] }
 0x21f   :  { %v2703_v23 = vpop.eup %2702  ;;  %v1193_v62 = vmul.f32 %v2701_v4, %v4100_v31 }
 0x220   :  { %2714 = vrsqrt.f32 %v1165_v61  ;;  %v2705_v24 = vpop.eup %2704  ;;  %2384 = vmatmul.mubr.f32.gmra.mrb[50].mxu0 %v1185_v50  ;;  %v1187_v6 = vmul.f32 %v2703_v23, %v4098_v15 }
 0x221   :  { %v2707_v44 = vpop.eup %2706  ;;  %2393 = vmatmul.mubr.f32.vlgmr.msra.gmra.mrb[48].mxu1 %v1191_v16  ;;  %2386 = vmatprep.mubr.f32.mxu0 %v1186_v1  ;;  %v1194_v56 = vmul.f32 %v2705_v24, %v4101_v43 }
 0x222   :  { %2395 = vmatprep.mubr.f32.mxu1 %v1192_v7  ;;  %v1188_v39 = vmul.f32 %v2707_v44, %v4099_v33  ;;  %v2709_v2 = vpop.eup %2708  ;;  %v4114_v44 = vld [vmem:[#allocation17_spill] sm:$0xff]  ;;  %v4115_v33 = vld [vmem:[#allocation18_spill] sm:$0xff] }
 0x223   :  { %v1195_v54 = vmul.f32 %v2709_v2, %v4103_v9 }
 0x224   :  { %2387 = vmatmul.mubr.f32.gmra.mrb[52].mxu0 %v1187_v6 }
 0x225   :  { %v2711_v29 = vpop.eup %2710  ;;  %2396 = vmatmul.mubr.f32.gmra.mrb[50].mxu1 %v1193_v62  ;;  %2389 = vmatprep.mubr.f32.mxu0 %v1188_v39 }
 0x226   :  { %v2713_v22 = vpop.eup %2712  ;;  %2398 = vmatprep.mubr.f32.mxu1 %v1194_v56  ;;  %v1189_v21 = vmul.f32 %v2711_v29, %v4102_v37  ;;  %v4116_v29 = vld [vmem:[#allocation19_spill] sm:$0xff] }
 0x227   :  { %v1196_v12 = vmul.f32 %v2713_v22, %v4104_v5 }
 0x228   :  { %2390 = vmatmul.mubr.f32.gmra.mrb[54].mxu0 %v1189_v21  ;;  %v4117_v21 = vld [vmem:[#allocation20_spill] sm:$0xff] }
 0x229   :  { %2399 = vmatmul.mubr.f32.gmra.mrb[52].mxu1 %v1195_v54 }
 0x22a   :  { %v2715_v8 = vpop.eup %2714  ;;  %2401 = vmatprep.mubr.f32.mxu1 %v1196_v12 }
 0x22b   :  { %v1197_v40 = vmul.f32 %v2715_v8, %v4105_v42  ;;  %v4118_v8 = vld [vmem:[#allocation21_spill] sm:$0xff] }
 0x22d   :  { %2402 = vmatmul.mubr.f32.gmra.mrb[54].mxu1 %v1197_v40 }
 0x2a4   :  { %v2270_v49 = vpop.f32.mrb[32].mxu0 }
 0x2a5   :  { %v830_v48 = vmax.f32 %v4106_v63, %v2270_v49  ;;  %v750_v47 = vpop.f32.mrb[33].mxu0  ;;  %v4119_v63 = vld [vmem:[#allocation22_spill] sm:$0xff] }
 0x2a6   :  { %v829_v53 = vmax.f32 %v4107_v3, %v750_v47 }
 0x2a7   :  { %v2326_v46 = vpop.f32.mrb[32].mxu1 }
 0x2a8   :  { %v1087_v11 = vmax.f32 %v830_v48, %v2326_v46  ;;  %v1007_v18 = vpop.f32.mrb[33].mxu1 }
 0x2a9   :  { %v1086_v36 = vmax.f32 %v829_v53, %v1007_v18  ;;  %v4120_v18 = vld [vmem:[#allocation23_spill] sm:$0xff] }
 0x2ac   :  { %v2273_v38 = vpop.f32.mrb[34].mxu0 }
 0x2ad   :  { %v832_v19 = vmax.f32 %v4108_v13, %v2273_v38  ;;  %v760_v41 = vpop.f32.mrb[35].mxu0 }
 0x2ae   :  { %v831_v58 = vmax.f32 %v4109_v10, %v760_v41 }
 0x2af   :  { %v2329_v28 = vpop.f32.mrb[34].mxu1 }
 0x2b0   :  { %v1089_v57 = vmax.f32 %v832_v19, %v2329_v28  ;;  %v1017_v26 = vpop.f32.mrb[35].mxu1  ;;  %v4121_v19 = vld [vmem:[#allocation24_spill] sm:$0xff] }
 0x2b1   :  { %v1088_v52 = vmax.f32 %v831_v58, %v1017_v26 }
 0x2b4   :  { %v2276_v14 = vpop.f32.mrb[36].mxu0 }
 0x2b5   :  { %v834_v25 = vmax.f32 %v4110_v20, %v2276_v14  ;;  %v770_v55 = vpop.f32.mrb[37].mxu0 }
 0x2b6   :  { %v833_v45 = vmax.f32 %v4111_v60, %v770_v55 }
 0x2b7   :  { %v2332_v59 = vpop.f32.mrb[36].mxu1 }
 0x2b8   :  { %v1091_v35 = vmax.f32 %v834_v25, %v2332_v59  ;;  %v1027_v17 = vpop.f32.mrb[37].mxu1 }
 0x2b9   :  { %v1090_v34 = vmax.f32 %v833_v45, %v1027_v17 }
 0x2bc   :  { %v2279_v30 = vpop.f32.mrb[38].mxu0 }
 0x2bd   :  { %v836_v27 = vmax.f32 %v4112_v51, %v2279_v30  ;;  %v780_v32 = vpop.f32.mrb[39].mxu0 }
 0x2be   :  { %v835_v61 = vmax.f32 %v4113_v0, %v780_v32 }
 0x2bf   :  { %v2335_v4 = vpop.f32.mrb[38].mxu1 }
 0x2c0   :  { %v3401_v50 = vmax.f32 %v836_v27, %v2335_v4  ;;  %v1037_v23 = vpop.f32.mrb[39].mxu1 }
 0x2c1   :  { %v3403_v16 = vmax.f32 %v835_v61, %v1037_v23 }
 0x2c7   :  { %v2338_v1 = vpop.f32.mrb[40].mxu1 }
 0x2c8   :  { %v1047_v24 = vpop.f32.mrb[41].mxu1 }
 0x2cc   :  { %v2282_v7 = vpop.f32.mrb[40].mxu0 }
 0x2cd   :  { %v838_v15 = vmax.f32 %v4114_v44, %v2282_v7  ;;  %v790_v6 = vpop.f32.mrb[41].mxu0 }
 0x2ce   :  { %v837_v39 = vmax.f32 %v4115_v33, %v790_v6 }
 0x2cf   :  { %v2341_v31 = vpop.f32.mrb[42].mxu1  ;;  %v1095_v62 = vmax.f32 %v838_v15, %v2338_v1 }
 0x2d0   :  { %v1057_v2 = vpop.f32.mrb[43].mxu1  ;;  %v1094_v43 = vmax.f32 %v837_v39, %v1047_v24 }
 0x2db   :  { %v2285_v56 = vpop.f32.mrb[42].mxu0 }
 0x2dc   :  { %v840_v22 = vmax.f32 %v4116_v29, %v2285_v56  ;;  %v800_v37 = vpop.f32.mrb[43].mxu0 }
 0x2dd   :  { %v839_v9 = vmax.f32 %v4117_v21, %v800_v37 }
 0x2de   :  { %v1097_v54 = vmax.f32 %v840_v22, %v2341_v31 }
 0x2df   :  { %v1096_v5 = vmax.f32 %v839_v9, %v1057_v2 }
 0x2e3   :  { %v2288_v12 = vpop.f32.mrb[44].mxu0 }
 0x2e4   :  { %v842_v42 = vmax.f32 %v4118_v8, %v2288_v12  ;;  %v2344_v40 = vpop.f32.mrb[44].mxu1  ;;  %v810_v49 = vpop.f32.mrb[45].mxu0 }
 0x2e5   :  { %v841_v48 = vmax.f32 %v4119_v63, %v810_v49  ;;  %v1067_v47 = vpop.f32.mrb[45].mxu1 }
 0x2e6   :  { %v1099_v3 = vmax.f32 %v842_v42, %v2344_v40 }
 0x2e7   :  { %v1098_v53 = vmax.f32 %v841_v48, %v1067_v47 }
 0x2eb   :  { %v2291_v46 = vpop.f32.mrb[46].mxu0 }
 0x2ec   :  { %v844_v38 = vmax.f32 %v4120_v18, %v2291_v46  ;;  %v820_v13 = vpop.f32.mrb[47].mxu0 }
 0x2ed   :  { %v843_v41 = vmax.f32 %v4121_v19, %v820_v13 }
 0x2ef   :  { %v2382_v10 = vpop.f32.mrb[48].mxu0 }
 0x2f0   :  { %v2347_v58 = vpop.f32.mrb[46].mxu1  ;;  %v3413_v28 = vmax.f32 %v1087_v11, %v2382_v10  ;;  %v1264_v26 = vpop.f32.mrb[49].mxu0 }
 0x2f1   :  { %v1101_v14 = vmax.f32 %v844_v38, %v2347_v58  ;;  %v1077_v20 = vpop.f32.mrb[47].mxu1  ;;  %v3415_v25 = vmax.f32 %v1086_v36, %v1264_v26 }
 0x2f2   :  { %v1100_v55 = vmax.f32 %v843_v41, %v1077_v20  ;;  %1363 = vmax.xlane.f32.xlu1 %v3413_v28 }
 0x2f3   :  { %1361 = vmax.xlane.f32.xlu0 %v3415_v25  ;;  %v2385_v60 = vpop.f32.mrb[50].mxu0 }
 0x2f4   :  { %v2394_v45 = vpop.f32.mrb[48].mxu1  ;;  %v3419_v59 = vmax.f32 %v1089_v57, %v2385_v60  ;;  %v1274_v17 = vpop.f32.mrb[51].mxu0 }
 0x2f5   :  { %v3421_v30 = vmax.f32 %v1095_v62, %v2394_v45  ;;  %v3423_v51 = vmax.f32 %v1088_v52, %v1274_v17  ;;  %v1304_v11 = vpop.f32.mrb[49].mxu1 }
 0x2f6   :  { %v3425_v27 = vmax.f32 %v1094_v43, %v1304_v11 }
 0x2f7   :  { %1379 = vmax.xlane.f32.xlu1 %v3421_v30  ;;  %v2388_v36 = vpop.f32.mrb[52].mxu0 }
 0x2f8   :  { %v2397_v32 = vpop.f32.mrb[50].mxu1  ;;  %1377 = vmax.xlane.f32.xlu0 %v3425_v27  ;;  %v3429_v0 = vmax.f32 %v1091_v35, %v2388_v36  ;;  %v1284_v61 = vpop.f32.mrb[53].mxu0 }
 0x2f9   :  { %v3431_v4 = vmax.f32 %v1097_v54, %v2397_v32  ;;  %v3433_v57 = vmax.f32 %v1090_v34, %v1284_v61  ;;  %v1314_v23 = vpop.f32.mrb[51].mxu1 }
 0x2fa   :  { %v3435_v1 = vmax.f32 %v1096_v5, %v1314_v23 }
 0x2fb   :  { %1367 = vmax.xlane.f32.xlu1 %v3419_v59  ;;  %v2391_v52 = vpop.f32.mrb[54].mxu0 }
 0x2fc   :  { %v2400_v24 = vpop.f32.mrb[52].mxu1  ;;  %1365 = vmax.xlane.f32.xlu0 %v3423_v51  ;;  %v3440_v7 = vmax.f32 %v3401_v50, %v2391_v52  ;;  %v1294_v44 = vpop.f32.mrb[55].mxu0  ;;  %v1359_v50 = vlaneseq }
 0x2fd   :  { %v3442_v35 = vmax.f32 %v1099_v3, %v2400_v24  ;;  %v3445_v15 = vmax.f32 %v3403_v16, %v1294_v44  ;;  %v1324_v34 = vpop.f32.mrb[53].mxu1 }
 0x2fe   :  { %v3447_v6 = vmax.f32 %v1098_v53, %v1324_v34  ;;  %v3463_v16 = vand.u32 127, %v1359_v50 }
 0x2ff   :  { %1383 = vmax.xlane.f32.xlu1 %v3431_v4 }
 0x300   :  { %v2403_v33 = vpop.f32.mrb[54].mxu1  ;;  %1381 = vmax.xlane.f32.xlu0 %v3435_v1 }
 0x301   :  { %v3451_v39 = vmax.f32 %v1101_v14, %v2403_v33  ;;  %v1334_v31 = vpop.f32.mrb[55].mxu1 }
 0x302   :  { %v3453_v62 = vmax.f32 %v1100_v55, %v1334_v31 }
 0x303   :  { %1371 = vmax.xlane.f32.xlu1 %v3429_v0 }
 0x304   :  { %1369 = vmax.xlane.f32.xlu0 %v3433_v57 }
 0x307   :  { %1387 = vmax.xlane.f32.xlu1 %v3442_v35 }
 0x308   :  { %1385 = vmax.xlane.f32.xlu0 %v3447_v6 }
 0x30b   :  { %1375 = vmax.xlane.f32.xlu1 %v3440_v7 }
 0x30c   :  { %1373 = vmax.xlane.f32.xlu0 %v3445_v15 }
 0x30f   :  { %1391 = vmax.xlane.f32.xlu1 %v3451_v39 }
 0x310   :  { %1389 = vmax.xlane.f32.xlu0 %v3453_v62 }
 0x37f   :  { %v3465_v2 = vpop.xlane.xlu1 %1363 }
 0x380   :  { %vm1394_vm0 = vcmp.eq.f32.partialorder %v3413_v28, %v3465_v2  ;;  %v3469_v43 = vpop.xlane.xlu0 %1361 }
 0x381   :  { %v3472_v56 = vsel %vm1394_vm0, %v3463_v16, 128  ;;  %vm1393_vm1 = vcmp.eq.f32.partialorder %v3415_v25, %v3469_v43 }
 0x382   :  { %v3477_v29 = vsel %vm1393_vm1, %v3463_v16, 128  ;;  %v1440_v22 = vshra.s32 %v3472_v56, 16 }
 0x383   :  { %v1426_v37 = vshra.s32 %v3477_v29, 16 }
 0x384   :  { %v3481_v21 = vpop.xlane.xlu1 %1379  ;;  %v3483_v9 = vcvt.s32.f32 %v1440_v22 }
 0x385   :  { %vm1402_vm2 = vcmp.eq.f32.partialorder %v3421_v30, %v3481_v21  ;;  %v3487_v54 = vpop.xlane.xlu0 %1377  ;;  %v3489_v5 = vcvt.s32.f32 %v1426_v37 }
 0x386   :  { %v3492_v12 = vsel %vm1402_vm2, %v3463_v16, 128  ;;  %vm1401_vm3 = vcmp.eq.f32.partialorder %v3425_v27, %v3487_v54  ;;  %1443 = vmin.xlane.f32.xlu1 %v3483_v9 }
 0x387   :  { %v3498_v8 = vsel %vm1401_vm3, %v3463_v16, 128  ;;  %1429 = vmin.xlane.f32.xlu0 %v3489_v5  ;;  %v1552_v42 = vshra.s32 %v3492_v12, 16 }
 0x388   :  { %v3502_v40 = vpop.xlane.xlu1 %1367  ;;  %v1538_v49 = vshra.s32 %v3498_v8, 16 }
 0x389   :  { %4122 = vst [vmem:[#allocation25_spill] sm:$0xff] %v3502_v40  ;;  %vm1396_vm4 = vcmp.eq.f32.partialorder %v3419_v59, %v3502_v40  ;;  %v3507_v63 = vpop.xlane.xlu0 %1365  ;;  %v3509_v48 = vcvt.s32.f32 %v1552_v42 }
 0x38a   :  { %4123 = vst [vmem:[#allocation27_spill] sm:$0xff] %v3507_v63  ;;  %v3512_v47 = vsel %vm1396_vm4, %v3463_v16, 128  ;;  %vm1395_vm5 = vcmp.eq.f32.partialorder %v3423_v51, %v3507_v63  ;;  %v3516_v3 = vcvt.s32.f32 %v1538_v49 }
 0x38b   :  { %v3519_v53 = vsel %vm1395_vm5, %v3463_v16, 128  ;;  %1555 = vmin.xlane.f32.xlu1 %v3509_v48  ;;  %v1468_v46 = vshra.s32 %v3512_v47, 16  ;;  %v1467_v63 = vand.u32 65535, %v3512_v47 }
 0x38c   :  { %v3523_v18 = vpop.xlane.xlu1 %1383  ;;  %1541 = vmin.xlane.f32.xlu0 %v3516_v3  ;;  %v1454_v38 = vshra.s32 %v3519_v53, 16 }
 0x38d   :  { %4124 = vst [vmem:[#allocation28_spill] sm:$0xff] %v3523_v18  ;;  %vm1404_vm6 = vcmp.eq.f32.partialorder %v3431_v4, %v3523_v18  ;;  %v3529_v13 = vpop.xlane.xlu0 %1381  ;;  %v3531_v19 = vcvt.s32.f32 %v1468_v46  ;;  %v1537_v18 = vand.u32 65535, %v3498_v8 }
 0x38e   :  { %4125 = vst [vmem:[#allocation30_spill] sm:$0xff] %v3529_v13  ;;  %v3534_v41 = vsel %vm1404_vm6, %v3463_v16, 128  ;;  %vm1403_vm7 = vcmp.eq.f32.partialorder %v3435_v1, %v3529_v13  ;;  %v3538_v10 = vcvt.s32.f32 %v1454_v38 }
 0x38f   :  { %v3541_v58 = vsel %vm1403_vm7, %v3463_v16, 128  ;;  %1471 = vmin.xlane.f32.xlu1 %v3531_v19  ;;  %v1580_v26 = vshra.s32 %v3534_v41, 16  ;;  %v1579_v47 = vand.u32 65535, %v3534_v41 }
 0x390   :  { %v3545_v14 = vpop.xlane.xlu1 %1371  ;;  %1457 = vmin.xlane.f32.xlu0 %v3538_v10  ;;  %v1566_v20 = vshra.s32 %v3541_v58, 16 }
 0x391   :  { %4126 = vst [vmem:[#allocation26_spill] sm:$0xff] %v3545_v14  ;;  %vm1398_vm8 = vcmp.eq.f32.partialorder %v3429_v0, %v3545_v14  ;;  %v3551_v55 = vpop.xlane.xlu0 %1369  ;;  %v3553_v60 = vcvt.s32.f32 %v1580_v26 }
 0x392   :  { %4127 = vst [vmem:[#allocation29_spill] sm:$0xff] %v3551_v55  ;;  %v3556_v45 = vsel %vm1398_vm8, %v3463_v16, 128  ;;  %vm1397_vm9 = vcmp.eq.f32.partialorder %v3433_v57, %v3551_v55  ;;  %v3560_v17 = vcvt.s32.f32 %v1566_v20 }
 0x393   :  { %v3563_v11 = vsel %vm1397_vm9, %v3463_v16, 128  ;;  %1583 = vmin.xlane.f32.xlu1 %v3553_v60  ;;  %v1496_v36 = vshra.s32 %v3556_v45, 16  ;;  %v1495_v41 = vand.u32 65535, %v3556_v45 }
 0x394   :  { %v3567_v32 = vpop.xlane.xlu1 %1387  ;;  %1569 = vmin.xlane.f32.xlu0 %v3560_v17  ;;  %v1482_v61 = vshra.s32 %v3563_v11, 16 }
 0x395   :  { %4128 = vst [vmem:[#allocation32_spill] sm:$0xff] %v3567_v32  ;;  %vm1406_vm10 = vcmp.eq.f32.partialorder %v3442_v35, %v3567_v32  ;;  %v3573_v23 = vpop.xlane.xlu0 %1385  ;;  %v3575_v52 = vcvt.s32.f32 %v1496_v36 }
 0x396   :  { %4129 = vst [vmem:[#allocation31_spill] sm:$0xff] %v3573_v23  ;;  %v3578_v24 = vsel %vm1406_vm10, %v3463_v16, 128  ;;  %vm1405_vm11 = vcmp.eq.f32.partialorder %v3447_v6, %v3573_v23  ;;  %v3582_v44 = vcvt.s32.f32 %v1482_v61 }
 0x397   :  { %v3585_v34 = vsel %vm1405_vm11, %v3463_v16, 128  ;;  %1499 = vmin.xlane.f32.xlu1 %v3575_v52  ;;  %v1608_v33 = vshra.s32 %v3578_v24, 16  ;;  %v1607_v45 = vand.u32 65535, %v3578_v24 }
 0x398   :  { %v3589_v31 = vpop.xlane.xlu1 %1375  ;;  %1485 = vmin.xlane.f32.xlu0 %v3582_v44  ;;  %v1594_v50 = vshra.s32 %v3585_v34, 16 }
 0x399   :  { %4130 = vst [vmem:[#allocation9_spill] sm:$0xff] %v3589_v31  ;;  %vm1400_vm12 = vcmp.eq.f32.partialorder %v3440_v7, %v3589_v31  ;;  %v3595_v22 = vpop.xlane.xlu0 %1373  ;;  %v3597_v37 = vcvt.s32.f32 %v1608_v33 }
 0x39a   :  { %4131 = vst [vmem:[#allocation10_spill] sm:$0xff] %v3595_v22  ;;  %v3600_v42 = vsel %vm1400_vm12, %v3463_v16, 128  ;;  %vm1399_vm13 = vcmp.eq.f32.partialorder %v3445_v15, %v3595_v22  ;;  %v3604_v49 = vcvt.s32.f32 %v1594_v50 }
 0x39b   :  { %v3607_v46 = vsel %vm1399_vm13, %v3463_v16, 128  ;;  %1611 = vmin.xlane.f32.xlu1 %v3597_v37  ;;  %v1524_v38 = vshra.s32 %v3600_v42, 16  ;;  %v1523_v24 = vand.u32 65535, %v3600_v42 }
 0x39c   :  { %v3611_v26 = vpop.xlane.xlu1 %1391  ;;  %1597 = vmin.xlane.f32.xlu0 %v3604_v49  ;;  %v1510_v20 = vshra.s32 %v3607_v46, 16 }
 0x39d   :  { %4132 = vst [vmem:[#allocation11_spill] sm:$0xff] %v3611_v26  ;;  %vm1408_vm14 = vcmp.eq.f32.partialorder %v3451_v39, %v3611_v26  ;;  %v3617_v36 = vpop.xlane.xlu0 %1389  ;;  %v3619_v61 = vcvt.s32.f32 %v1524_v38 }
 0x39e   :  { %4133 = vst [vmem:[#allocation12_spill] sm:$0xff] %v3617_v36  ;;  %v3622_v33 = vsel %vm1408_vm14, %v3463_v16, 128  ;;  %vm1407_vm15 = vcmp.eq.f32.partialorder %v3453_v62, %v3617_v36  ;;  %v3626_v50 = vcvt.s32.f32 %v1510_v20  ;;  %v1439_v20 = vand.u32 65535, %v3472_v56 }
 0x39f   :  { %v3629_v22 = vsel %vm1407_vm15, %v3463_v16, 128  ;;  %1527 = vmin.xlane.f32.xlu1 %v3619_v61  ;;  %v1636_v31 = vshra.s32 %v3622_v33, 16  ;;  %v1425_v36 = vand.u32 65535, %v3477_v29  ;;  %v1635_v42 = vand.u32 65535, %v3622_v33 }
 0x3a0   :  { %1513 = vmin.xlane.f32.xlu0 %v3626_v50  ;;  %v1622_v38 = vshra.s32 %v3629_v22, 16  ;;  %v1441_v55 = vcvt.s32.f32 %v1439_v20 }
 0x3a1   :  { %v3635_v26 = vcvt.s32.f32 %v1636_v31  ;;  %v1427_v31 = vcvt.s32.f32 %v1425_v36 }
 0x3a2   :  { %v3637_v23 = vcvt.s32.f32 %v1622_v38  ;;  %v1551_v38 = vand.u32 65535, %v3492_v12  ;;  %v1453_v12 = vand.u32 65535, %v3519_v53  ;;  %v1565_v53 = vand.u32 65535, %v3541_v58 }
 0x3a3   :  { %1639 = vmin.xlane.f32.xlu1 %v3635_v26  ;;  %v1481_v58 = vand.u32 65535, %v3563_v11  ;;  %v1593_v11 = vand.u32 65535, %v3585_v34  ;;  %v1509_v34 = vand.u32 65535, %v3607_v46  ;;  %v1621_v46 = vand.u32 65535, %v3629_v22 }
 0x3a4   :  { %1625 = vmin.xlane.f32.xlu0 %v3637_v23  ;;  %v1553_v20 = vcvt.s32.f32 %v1551_v38 }
 0x3a5   :  { %v1623_v33 = vcvt.s32.f32 %v1621_v46 }
 0x413   :  { %v3643_v32 = vpop.xlane.xlu1 %1443 }
 0x414   :  { %v3645_v14 = vpop.xlane.xlu0 %1429  ;;  %vm1445_vm0 = vcmp.eq.f32.partialorder %v3483_v9, %v3643_v32  ;;  %v1539_v9 = vcvt.s32.f32 %v1537_v18 }
 0x415   :  { %v1446_v13 = vsel %vm1445_vm0, %v1441_v55, inf  ;;  %vm1431_vm1 = vcmp.eq.f32.partialorder %v3489_v5, %v3645_v14  ;;  %vm1921_vm0 = vcmask 7168  }
 0x416   :  { %1447 = vmin.xlane.f32.xlu1 %v1446_v13  ;;  %v1432_v56 = vsel %vm1431_vm1, %v1427_v31, inf  ;;  %v1469_v13 = vcvt.s32.f32 %v1467_v63  ;;  %v1581_v63 = vcvt.s32.f32 %v1579_v47 }
 0x417   :  { %1433 = vmin.xlane.f32.xlu0 %v1432_v56 }
 0x418   :  { %v3653_v29 = vpop.xlane.xlu1 %1555 }
 0x419   :  { %v3656_v40 = vpop.xlane.xlu0 %1541  ;;  %vm1557_vm2 = vcmp.eq.f32.partialorder %v3509_v48, %v3653_v29  ;;  %v1455_v48 = vcvt.s32.f32 %v1453_v12 }
 0x41a   :  { %v1558_v55 = vsel %vm1557_vm2, %v1553_v20, inf  ;;  %vm1543_vm3 = vcmp.eq.f32.partialorder %v3516_v3, %v3656_v40 }
 0x41b   :  { %1559 = vmin.xlane.f32.xlu1 %v1558_v55  ;;  %v1544_v5 = vsel %vm1543_vm3, %v1539_v9, inf  ;;  %v1497_v9 = vcvt.s32.f32 %v1495_v41 }
 0x41c   :  { %v3663_v8 = vpop.xlane.xlu1 %1471  ;;  %1545 = vmin.xlane.f32.xlu0 %v1544_v5 }
 0x41d   :  { %v3666_v36 = vpop.xlane.xlu0 %1457  ;;  %vm1473_vm4 = vcmp.eq.f32.partialorder %v3531_v19, %v3663_v8  ;;  %v1567_v19 = vcvt.s32.f32 %v1565_v53 }
 0x41e   :  { %v1474_v18 = vsel %vm1473_vm4, %v1469_v13, inf  ;;  %vm1459_vm5 = vcmp.eq.f32.partialorder %v3538_v10, %v3666_v36  ;;  %v1609_v13 = vcvt.s32.f32 %v1607_v45  ;;  %v1562_v45 = vcvt.f32.s32 %v3653_v29 }
 0x41f   :  { %1475 = vmin.xlane.f32.xlu1 %v1474_v18  ;;  %v1460_v3 = vsel %vm1459_vm5, %v1455_v48, inf  ;;  %v1525_v18 = vcvt.s32.f32 %v1523_v24 }
 0x420   :  { %v3673_v31 = vpop.xlane.xlu1 %1583  ;;  %1461 = vmin.xlane.f32.xlu0 %v1460_v3  ;;  %v1563_v24 = vshll.u32 %v1562_v45, 16 }
 0x421   :  { %v3676_v38 = vpop.xlane.xlu0 %1569  ;;  %vm1585_vm6 = vcmp.eq.f32.partialorder %v3553_v60, %v3673_v31  ;;  %v1483_v60 = vcvt.s32.f32 %v1481_v58 }
 0x422   :  { %v1586_v56 = vsel %vm1585_vm6, %v1581_v63, inf  ;;  %vm1571_vm7 = vcmp.eq.f32.partialorder %v3560_v17, %v3676_v38 }
 0x423   :  { %1587 = vmin.xlane.f32.xlu1 %v1586_v56  ;;  %v1572_v10 = vsel %vm1571_vm7, %v1567_v19, inf  ;;  %v1637_v19 = vcvt.s32.f32 %v1635_v42  ;;  %v1436_v56 = vcvt.f32.s32 %v3645_v14 }
 0x424   :  { %v3683_v20 = vpop.xlane.xlu1 %1499  ;;  %1573 = vmin.xlane.f32.xlu0 %v1572_v10 }
 0x425   :  { %v3686_v12 = vpop.xlane.xlu0 %1485  ;;  %vm1501_vm8 = vcmp.eq.f32.partialorder %v3575_v52, %v3683_v20  ;;  %v1595_v52 = vcvt.s32.f32 %v1593_v11 }
 0x426   :  { %v1502_v55 = vsel %vm1501_vm8, %v1497_v9, inf  ;;  %vm1487_vm9 = vcmp.eq.f32.partialorder %v3582_v44, %v3686_v12 }
 0x427   :  { %1503 = vmin.xlane.f32.xlu1 %v1502_v55  ;;  %v1488_v17 = vsel %vm1487_vm9, %v1483_v60, inf  ;;  %v1437_v55 = vshll.u32 %v1436_v56, 16 }
 0x428   :  { %v3693_v5 = vpop.xlane.xlu1 %1611  ;;  %1489 = vmin.xlane.f32.xlu0 %v1488_v17  ;;  %v1548_v17 = vcvt.f32.s32 %v3656_v40 }
 0x429   :  { %v3696_v47 = vpop.xlane.xlu0 %1597  ;;  %vm1613_vm10 = vcmp.eq.f32.partialorder %v3597_v37, %v3693_v5  ;;  %v1511_v37 = vcvt.s32.f32 %v1509_v34 }
 0x42a   :  { %v1614_v48 = vsel %vm1613_vm10, %v1609_v13, inf  ;;  %vm1599_vm11 = vcmp.eq.f32.partialorder %v3604_v49, %v3696_v47 }
 0x42b   :  { %1615 = vmin.xlane.f32.xlu1 %v1614_v48  ;;  %v1600_v44 = vsel %vm1599_vm11, %v1595_v52, inf  ;;  %v1478_v52 = vcvt.f32.s32 %v3663_v8  ;;  %v1549_v8 = vshll.u32 %v1548_v17, 16 }
 0x42c   :  { %v3703_v53 = vpop.xlane.xlu1 %1527  ;;  %1601 = vmin.xlane.f32.xlu0 %v1600_v44 }
 0x42d   :  { %v3706_v3 = vpop.xlane.xlu0 %1513  ;;  %vm1529_vm12 = vcmp.eq.f32.partialorder %v3619_v61, %v3703_v53  ;;  %v1479_v42 = vshll.u32 %v1478_v52, 16 }
 0x42e   :  { %v1530_v63 = vsel %vm1529_vm12, %v1525_v18, inf  ;;  %vm1515_vm13 = vcmp.eq.f32.partialorder %v3626_v50, %v3706_v3  ;;  %v1450_v50 = vcvt.f32.s32 %v3643_v32  ;;  %v1464_v32 = vcvt.f32.s32 %v3666_v36 }
 0x42f   :  { %1531 = vmin.xlane.f32.xlu1 %v1530_v63  ;;  %v1516_v49 = vsel %vm1515_vm13, %v1511_v37, inf  ;;  %v1590_v63 = vcvt.f32.s32 %v3673_v31 }
 0x430   :  { %v3713_v41 = vpop.xlane.xlu1 %1639  ;;  %1517 = vmin.xlane.f32.xlu0 %v1516_v49  ;;  %v1451_v9 = vshll.u32 %v1450_v50, 16  ;;  %v1465_v46 = vshll.u32 %v1464_v32, 16  ;;  %v1534_v32 = vcvt.f32.s32 %v3703_v53 }
 0x431   :  { %v3715_v58 = vpop.xlane.xlu0 %1625  ;;  %vm1641_vm14 = vcmp.eq.f32.partialorder %v3635_v26, %v3713_v41 }
 0x432   :  { %v1642_v61 = vsel %vm1641_vm14, %v1637_v19, inf  ;;  %vm1627_vm15 = vcmp.eq.f32.partialorder %v3637_v23, %v3715_v58  ;;  %v1576_v19 = vcvt.f32.s32 %v3676_v38  ;;  %v1591_v38 = vshll.u32 %v1590_v63, 16 }
 0x433   :  { %1643 = vmin.xlane.f32.xlu1 %v1642_v61  ;;  %v1628_v22 = vsel %vm1627_vm15, %v1623_v33, inf }
 0x434   :  { %1629 = vmin.xlane.f32.xlu0 %v1628_v22  ;;  %v1506_v22 = vcvt.f32.s32 %v3683_v20  ;;  %v1577_v45 = vshll.u32 %v1576_v19, 16 }
 0x4a3   :  { %v1448_v10 = vpop.xlane.xlu1 %1447 }
 0x4a4   :  { %v1449_v60 = vcvt.f32.s32 %v1448_v10  ;;  %v1434_v11 = vpop.xlane.xlu0 %1433  ;;  %v1492_v10 = vcvt.f32.s32 %v3686_v12 }
 0x4a5   :  { %v1435_v26 = vcvt.f32.s32 %v1434_v11  ;;  %v1507_v11 = vshll.u32 %v1506_v22, 16 }
 0x4a6   :  { %v1452_v13 = vadd.s32 %v1451_v9, %v1449_v60  ;;  %v1493_v17 = vshll.u32 %v1492_v10, 16 }
 0x4a7   :  { %v1438_v23 = vadd.s32 %v1437_v55, %v1435_v26 }
 0x4a8   :  { %1939 = vst.msk [vmem:[%s4051_s4 + $0x8] sm:$0xff] %vm1921_vm0, %v1452_v13  ;;  %v1560_v14 = vpop.xlane.xlu1 %1559  ;;  %vm1650_vm1 = vcmp.eq.s32.totalorder %v3463_v16, %v1452_v13  ;;  %v1618_v13 = vcvt.f32.s32 %v3693_v5 }
 0x4a9   :  { %1938 = vst.msk [vmem:[%s4051_s4] sm:$0xff] %vm1921_vm0, %v1438_v23  ;;  %v1561_v40 = vcvt.f32.s32 %v1560_v14  ;;  %v1546_v29 = vpop.xlane.xlu0 %1545  ;;  %v1666_v34 = vsel %vm1650_vm1, -inf, %v3413_v28  ;;  %vm1649_vm2 = vcmp.eq.s32.totalorder %v3463_v16, %v1438_v23 }
 0x4aa   :  { %v1547_v48 = vcvt.f32.s32 %v1546_v29  ;;  %1683 = vmax.xlane.f32.xlu1 %v1666_v34  ;;  %v1665_v44 = vsel %vm1649_vm2, -inf, %v3415_v25  ;;  %v1520_v34 = vcvt.f32.s32 %v3706_v3 }
 0x4ab   :  { %v1564_v18 = vadd.s32 %v1563_v24, %v1561_v40  ;;  %1681 = vmax.xlane.f32.xlu0 %v1665_v44  ;;  %v1604_v24 = vcvt.f32.s32 %v3696_v47  ;;  %v1619_v47 = vshll.u32 %v1618_v13, 16 }
 0x4ac   :  { %v1550_v36 = vadd.s32 %v1549_v8, %v1547_v48  ;;  %v1476_v37 = vpop.xlane.xlu1 %1475 }
 0x4ad   :  { %1947 = vst.msk [vmem:[%s4051_s4 + $0x48] sm:$0xff] %vm1921_vm0, %v1564_v18  ;;  %v1477_v28 = vcvt.f32.s32 %v1476_v37  ;;  %v1462_v49 = vpop.xlane.xlu0 %1461  ;;  %vm1658_vm3 = vcmp.eq.s32.totalorder %v3463_v16, %v1564_v18  ;;  %v1605_v48 = vshll.u32 %v1604_v24, 16  ;;  %v1535_v18 = vshll.u32 %v1534_v32, 16 }
 0x4ae   :  { %1946 = vst.msk [vmem:[%s4051_s4 + $0x40] sm:$0xff] %vm1921_vm0, %v1550_v36  ;;  %v1463_v25 = vcvt.f32.s32 %v1462_v49  ;;  %v1674_v33 = vsel %vm1658_vm3, -inf, %v3421_v30  ;;  %vm1657_vm4 = vcmp.eq.s32.totalorder %v3463_v16, %v1550_v36  ;;  %v1521_v37 = vshll.u32 %v1520_v34, 16 }
 0x4af   :  { %v1480_v31 = vadd.s32 %v1479_v42, %v1477_v28  ;;  %1699 = vmax.xlane.f32.xlu1 %v1674_v33  ;;  %v1673_v61 = vsel %vm1657_vm4, -inf, %v3425_v27  ;;  %v1632_v28 = vcvt.f32.s32 %v3715_v58  ;;  %v1722_v24 = vsub.f32 1.0, %v3481_v21 }
 0x4b0   :  { %v1466_v50 = vadd.s32 %v1465_v46, %v1463_v25  ;;  %v1588_v56 = vpop.xlane.xlu1 %1587  ;;  %1697 = vmax.xlane.f32.xlu0 %v1673_v61  ;;  %v1646_v46 = vcvt.f32.s32 %v3713_v41  ;;  %v1721_v32 = vsub.f32 1.0, %v3487_v54 }
 0x4b1   :  { %1941 = vst.msk [vmem:[%s4051_s4 + $0x18] sm:$0xff] %vm1921_vm0, %v1480_v31  ;;  %v1589_v30 = vcvt.f32.s32 %v1588_v56  ;;  %v1574_v9 = vpop.xlane.xlu0 %1573  ;;  %vm1652_vm5 = vcmp.eq.s32.totalorder %v3463_v16, %v1480_v31 }
 0x4b2   :  { %1940 = vst.msk [vmem:[%s4051_s4 + $0x10] sm:$0xff] %vm1921_vm0, %v1466_v50  ;;  %v1575_v27 = vcvt.f32.s32 %v1574_v9  ;;  %v1668_v20 = vsel %vm1652_vm5, -inf, %v3419_v59  ;;  %vm1651_vm6 = vcmp.eq.s32.totalorder %v3463_v16, %v1466_v50  ;;  %v1647_v31 = vshll.u32 %v1646_v46, 16  ;;  %v4137_v46 = vld [vmem:[#allocation30_spill] sm:$0xff] }
 0x4b3   :  { %v1592_v12 = vadd.s32 %v1591_v38, %v1589_v30  ;;  %1687 = vmax.xlane.f32.xlu1 %v1668_v20  ;;  %v1667_v60 = vsel %vm1651_vm6, -inf, %v3423_v51 }
 0x4b4   :  { %v1578_v55 = vadd.s32 %v1577_v45, %v1575_v27  ;;  %v1504_v26 = vpop.xlane.xlu1 %1503  ;;  %1685 = vmax.xlane.f32.xlu0 %v1667_v60 }
 0x4b5   :  { %1949 = vst.msk [vmem:[%s4051_s4 + $0x58] sm:$0xff] %vm1921_vm0, %v1592_v12  ;;  %v1505_v23 = vcvt.f32.s32 %v1504_v26  ;;  %v1490_v59 = vpop.xlane.xlu0 %1489  ;;  %vm1660_vm7 = vcmp.eq.s32.totalorder %v3463_v16, %v1592_v12 }
 0x4b6   :  { %1948 = vst.msk [vmem:[%s4051_s4 + $0x50] sm:$0xff] %vm1921_vm0, %v1578_v55  ;;  %v1491_v51 = vcvt.f32.s32 %v1490_v59  ;;  %v1676_v52 = vsel %vm1660_vm7, -inf, %v3431_v4  ;;  %vm1659_vm8 = vcmp.eq.s32.totalorder %v3463_v16, %v1578_v55 }
 0x4b7   :  { %v1508_v5 = vadd.s32 %v1507_v11, %v1505_v23  ;;  %1703 = vmax.xlane.f32.xlu1 %v1676_v52  ;;  %v1675_v14 = vsel %vm1659_vm8, -inf, %v3435_v1  ;;  %v1713_v23 = vsub.f32 1.0, %v3469_v43 }
 0x4b8   :  { %v1494_v40 = vadd.s32 %v1493_v17, %v1491_v51  ;;  %v1616_v29 = vpop.xlane.xlu1 %1615  ;;  %1701 = vmax.xlane.f32.xlu0 %v1675_v14 }
 0x4b9   :  { %1943 = vst.msk [vmem:[%s4051_s4 + $0x28] sm:$0xff] %vm1921_vm0, %v1508_v5  ;;  %v1617_v4 = vcvt.f32.s32 %v1616_v29  ;;  %v1602_v8 = vpop.xlane.xlu0 %1601  ;;  %vm1654_vm9 = vcmp.eq.s32.totalorder %v3463_v16, %v1508_v5 }
 0x4ba   :  { %1942 = vst.msk [vmem:[%s4051_s4 + $0x20] sm:$0xff] %vm1921_vm0, %v1494_v40  ;;  %v1603_v1 = vcvt.f32.s32 %v1602_v8  ;;  %v1670_v53 = vsel %vm1654_vm9, -inf, %v3429_v0  ;;  %vm1653_vm10 = vcmp.eq.s32.totalorder %v3463_v16, %v1494_v40  ;;  %v1738_v8 = vmax.f32 %v1722_v24, 0.0 }
 0x4bb   :  { %v1620_v3 = vadd.s32 %v1619_v47, %v1617_v4  ;;  %1691 = vmax.xlane.f32.xlu1 %v1670_v53  ;;  %v1669_v44 = vsel %vm1653_vm10, -inf, %v3433_v57  ;;  %v4135_v53 = vld [vmem:[#allocation27_spill] sm:$0xff] }
 0x4bc   :  { %v1606_v42 = vadd.s32 %v1605_v48, %v1603_v1  ;;  %v1532_v36 = vpop.xlane.xlu1 %1531  ;;  %1689 = vmax.xlane.f32.xlu0 %v1669_v44  ;;  %v4134_v1 = vld [vmem:[#allocation25_spill] sm:$0xff] }
 0x4bd   :  { %1951 = vst.msk [vmem:[%s4051_s4 + $0x68] sm:$0xff] %vm1921_vm0, %v1620_v3  ;;  %v1533_v63 = vcvt.f32.s32 %v1532_v36  ;;  %v1518_v0 = vpop.xlane.xlu0 %1517  ;;  %vm1662_vm11 = vcmp.eq.s32.totalorder %v3463_v16, %v1620_v3  ;;  %v1716_v21 = vsub.f32 1.0, %v4134_v1  ;;  %v1715_v3 = vsub.f32 1.0, %v4135_v53  ;;  %v4136_v36 = vld [vmem:[#allocation28_spill] sm:$0xff] }
 0x4be   :  { %1950 = vst.msk [vmem:[%s4051_s4 + $0x60] sm:$0xff] %vm1921_vm0, %v1606_v42  ;;  %v1519_v57 = vcvt.f32.s32 %v1518_v0  ;;  %v1678_v49 = vsel %vm1662_vm11, -inf, %v3442_v35  ;;  %vm1661_vm12 = vcmp.eq.s32.totalorder %v3463_v16, %v1606_v42  ;;  %v1633_v35 = vshll.u32 %v1632_v28, 16  ;;  %v4138_v28 = vld [vmem:[#allocation26_spill] sm:$0xff] }
 0x4bf   :  { %v1536_v41 = vadd.s32 %v1535_v18, %v1533_v63  ;;  %1707 = vmax.xlane.f32.xlu1 %v1678_v49  ;;  %v1677_v19 = vsel %vm1661_vm12, -inf, %v3447_v6  ;;  %v1737_v42 = vmax.f32 %v1721_v32, 0.0  ;;  %v1723_v63 = vsub.f32 1.0, %v4137_v46  ;;  %v4139_v49 = vld [vmem:[#allocation29_spill] sm:$0xff] }
 0x4c0   :  { %v1522_v25 = vadd.s32 %v1521_v37, %v1519_v57  ;;  %v1644_v33 = vpop.xlane.xlu1 %1643  ;;  %1705 = vmax.xlane.f32.xlu0 %v1677_v19  ;;  %v1724_v37 = vsub.f32 1.0, %v4136_v36  ;;  %v1718_v57 = vsub.f32 1.0, %v4138_v28  ;;  %v4140_v19 = vld [vmem:[#allocation32_spill] sm:$0xff] }
 0x4c1   :  { %1945 = vst.msk [vmem:[%s4051_s4 + $0x38] sm:$0xff] %vm1921_vm0, %v1536_v41  ;;  %v1645_v58 = vcvt.f32.s32 %v1644_v33  ;;  %v1630_v61 = vpop.xlane.xlu0 %1629  ;;  %vm1656_vm13 = vcmp.eq.s32.totalorder %v3463_v16, %v1536_v41  ;;  %v1717_v41 = vsub.f32 1.0, %v4139_v49 }
 0x4c2   :  { %1944 = vst.msk [vmem:[%s4051_s4 + $0x30] sm:$0xff] %vm1921_vm0, %v1522_v25  ;;  %v1631_v6 = vcvt.f32.s32 %v1630_v61  ;;  %v1672_v22 = vsel %vm1656_vm13, -inf, %v3440_v7  ;;  %vm1655_vm14 = vcmp.eq.s32.totalorder %v3463_v16, %v1522_v25  ;;  %v1726_v25 = vsub.f32 1.0, %v4140_v19 }
 0x4c3   :  { %v1648_v50 = vadd.s32 %v1647_v31, %v1645_v58  ;;  %1695 = vmax.xlane.f32.xlu1 %v1672_v22  ;;  %v1671_v56 = vsel %vm1655_vm14, -inf, %v3445_v15  ;;  %v4141_v31 = vld [vmem:[#allocation31_spill] sm:$0xff]  ;;  %v1732_v22 = vmax.f32 %v1716_v21, 0.0 }
 0x4c4   :  { %v1634_v38 = vadd.s32 %v1633_v35, %v1631_v6  ;;  %1693 = vmax.xlane.f32.xlu0 %v1671_v56  ;;  %v1725_v58 = vsub.f32 1.0, %v4141_v31 }
 0x4c5   :  { %1953 = vst.msk [vmem:[%s4051_s4 + $0x78] sm:$0xff] %vm1921_vm0, %v1648_v50  ;;  %vm1664_vm15 = vcmp.eq.s32.totalorder %v3463_v16, %v1648_v50  ;;  %v1731_v50 = vmax.f32 %v1715_v3, 0.0 }
 0x4c6   :  { %1952 = vst.msk [vmem:[%s4051_s4 + $0x70] sm:$0xff] %vm1921_vm0, %v1634_v38  ;;  %v1680_v7 = vsel %vm1664_vm15, -inf, %v3451_v39  ;;  %vm1663_vm1 = vcmp.eq.s32.totalorder %v3463_v16, %v1634_v38  ;;  %v1714_v16 = vsub.f32 1.0, %v3465_v2  ;;  %v1729_v2 = vmax.f32 %v1713_v23, 0.0 }
 0x4c7   :  { %1711 = vmax.xlane.f32.xlu1 %v1680_v7  ;;  %v1679_v15 = vsel %vm1663_vm1, -inf, %v3453_v62 }
 0x4c8   :  { %1709 = vmax.xlane.f32.xlu0 %v1679_v15  ;;  %v1730_v14 = vmax.f32 %v1714_v16, 0.0 }
 0x537   :  { %v1684_v10 = vpop.xlane.xlu1 %1683 }
 0x538   :  { %v1746_v30 = vsub.f32 1.0, %v1684_v10  ;;  %v1682_v9 = vpop.xlane.xlu0 %1681 }
 0x539   :  { %v1745_v45 = vsub.f32 1.0, %v1682_v9 }
 0x53a   :  { %v1762_v27 = vmax.f32 %v1746_v30, 0.0 }
 0x53b   :  { %v1761_v20 = vmax.f32 %v1745_v45, 0.0  ;;  %v1740_v45 = vmax.f32 %v1724_v37, 0.0 }
 0x53c   :  { %2716 = vrcp.f32 %v1762_v27  ;;  %v1700_v12 = vpop.xlane.xlu1 %1699  ;;  %v1739_v27 = vmax.f32 %v1723_v63, 0.0 }
 0x53d   :  { %2718 = vrcp.f32 %v1761_v20  ;;  %v1754_v60 = vsub.f32 1.0, %v1700_v12  ;;  %v1698_v11 = vpop.xlane.xlu0 %1697  ;;  %v3855_v20 = vmax.f32 %v1718_v57, 0.0 }
 0x53e   :  { %v1753_v55 = vsub.f32 1.0, %v1698_v11  ;;  %v3860_v11 = vmax.f32 %v1726_v25, 0.0 }
 0x53f   :  { %v1770_v26 = vmax.f32 %v1754_v60, 0.0  ;;  %v3858_v60 = vmax.f32 %v1717_v41, 0.0 }
 0x540   :  { %v1769_v39 = vmax.f32 %v1753_v55, 0.0  ;;  %v1688_v17 = vpop.xlane.xlu1 %1687  ;;  %v3862_v55 = vmax.f32 %v1725_v58, 0.0 }
 0x541   :  { %2720 = vrcp.f32 %v1770_v26  ;;  %v1748_v62 = vsub.f32 1.0, %v1688_v17  ;;  %v1686_v13 = vpop.xlane.xlu0 %1685 }
 0x542   :  { %2722 = vrcp.f32 %v1769_v39  ;;  %v1747_v59 = vsub.f32 1.0, %v1686_v13  ;;  %v4142_v13 = vld [vmem:[#allocation9_spill] sm:$0xff] }
 0x543   :  { %v1764_v51 = vmax.f32 %v1748_v62, 0.0  ;;  %v1720_v23 = vsub.f32 1.0, %v4142_v13 }
 0x544   :  { %v1763_v52 = vmax.f32 %v1747_v59, 0.0  ;;  %v1704_v5 = vpop.xlane.xlu1 %1703 }
 0x545   :  { %2724 = vrcp.f32 %v1764_v51  ;;  %v1756_v40 = vsub.f32 1.0, %v1704_v5  ;;  %v1702_v29 = vpop.xlane.xlu0 %1701 }
 0x546   :  { %v2717_v47 = vpop.eup %2716  ;;  %2726 = vrcp.f32 %v1763_v52  ;;  %v1755_v34 = vsub.f32 1.0, %v1702_v29  ;;  %v4143_v52 = vld [vmem:[#allocation10_spill] sm:$0xff] }
 0x547   :  { %v2719_v4 = vpop.eup %2718  ;;  %v3837_v43 = vmul.f32 %v2717_v47, %v1730_v14  ;;  %v1772_v48 = vmax.f32 %v1756_v40, 0.0  ;;  %v1719_v5 = vsub.f32 1.0, %v4143_v52 }
 0x548   :  { %v3841_v44 = vmul.f32 %v2719_v4, %v1729_v2  ;;  %v1771_v18 = vmax.f32 %v1755_v34, 0.0  ;;  %v1692_v54 = vpop.xlane.xlu1 %1691 }
 0x549   :  { %2728 = vrsqrt.f32 %v3837_v43  ;;  %v1690_v0 = vpop.xlane.xlu0 %1689  ;;  %v1750_v61 = vsub.f32 1.0, %v1692_v54  ;;  %vm1818_vm2 = vcmp.eq.f32.partialorder %v3837_v43, inf  ;;  %vm1820_vm3 = vcmp.eq.f32.partialorder %v3837_v43, 0.0 }
 0x54a   :  { %2730 = vrsqrt.f32 %v3841_v44  ;;  %v1749_v35 = vsub.f32 1.0, %v1690_v0  ;;  %v1821_v32 = vand.u32 2147483648, %v3837_v43  ;;  %vm1811_vm4 = vcmp.eq.f32.partialorder %v3841_v44, inf }
 0x54b   :  { %v2721_v33 = vpop.eup %2720  ;;  %2732 = vrcp.f32 %v1772_v48  ;;  %v1766_v15 = vmax.f32 %v1750_v61, 0.0  ;;  %vm1813_vm5 = vcmp.eq.f32.partialorder %v3841_v44, 0.0  ;;  %v1814_v48 = vand.u32 2147483648, %v3841_v44 }
 0x54c   :  { %v2723_v6 = vpop.eup %2722  ;;  %v3851_v56 = vmul.f32 %v2721_v33, %v1738_v8  ;;  %2734 = vrcp.f32 %v1771_v18  ;;  %v1708_v38 = vpop.xlane.xlu1 %1707  ;;  %v1765_v10 = vmax.f32 %v1749_v35, 0.0 }
 0x54d   :  { %v3853_v7 = vmul.f32 %v2723_v6, %v1737_v42  ;;  %v1758_v30 = vsub.f32 1.0, %v1708_v38  ;;  %v1706_v9 = vpop.xlane.xlu0 %1705 }
 0x54e   :  { %2736 = vrsqrt.f32 %v3851_v56  ;;  %v1757_v16 = vsub.f32 1.0, %v1706_v9  ;;  %vm1874_vm6 = vcmp.eq.f32.partialorder %v3851_v56, inf  ;;  %vm1876_vm7 = vcmp.eq.f32.partialorder %v3851_v56, 0.0 }
 0x54f   :  { %v2725_v12 = vpop.eup %2724  ;;  %2738 = vrsqrt.f32 %v3853_v7  ;;  %v1774_v17 = vmax.f32 %v1758_v30, 0.0  ;;  %vm1867_vm8 = vcmp.eq.f32.partialorder %v3853_v7, inf  ;;  %vm1869_vm9 = vcmp.eq.f32.partialorder %v3853_v7, 0.0 }
 0x550   :  { %v2727_v26 = vpop.eup %2726  ;;  %v3865_v39 = vmul.f32 %v2725_v12, %v1732_v22  ;;  %2740 = vrcp.f32 %v1766_v15  ;;  %v1696_v62 = vpop.xlane.xlu1 %1695  ;;  %v1773_v47 = vmax.f32 %v1757_v16, 0.0  ;;  %v1870_v41 = vand.u32 2147483648, %v3853_v7 }
 0x551   :  { %v3868_v59 = vmul.f32 %v2727_v26, %v1731_v50  ;;  %2742 = vrcp.f32 %v1765_v10  ;;  %v1752_v24 = vsub.f32 1.0, %v1696_v62  ;;  %v1694_v51 = vpop.xlane.xlu0 %1693  ;;  %v1736_v62 = vmax.f32 %v1720_v23, 0.0 }
 0x552   :  { %2744 = vrsqrt.f32 %v3865_v39  ;;  %v1751_v1 = vsub.f32 1.0, %v1694_v51  ;;  %vm1832_vm10 = vcmp.eq.f32.partialorder %v3865_v39, inf  ;;  %vm1834_vm11 = vcmp.eq.f32.partialorder %v3865_v39, 0.0 }
 0x553   :  { %v2729_v14 = vpop.eup %2728  ;;  %2746 = vrsqrt.f32 %v3868_v59  ;;  %v1768_v2 = vmax.f32 %v1752_v24, 0.0  ;;  %vm1825_vm12 = vcmp.eq.f32.partialorder %v3868_v59, inf  ;;  %vm1827_vm13 = vcmp.eq.f32.partialorder %v3868_v59, 0.0  ;;  %v4144_v24 = vld [vmem:[#allocation11_spill] sm:$0xff] }
 0x554   :  { %v2731_v40 = vpop.eup %2730  ;;  %v1817_v29 = vmul.f32 %v2729_v14, %v3837_v43  ;;  %2748 = vrcp.f32 %v1774_v17  ;;  %v1712_v34 = vpop.xlane.xlu1 %1711  ;;  %v1767_v19 = vmax.f32 %v1751_v1, 0.0  ;;  %v1728_v51 = vsub.f32 1.0, %v4144_v24 }
 0x555   :  { %v2733_v4 = vpop.eup %2732  ;;  %v1810_v8 = vmul.f32 %v2731_v40, %v3841_v44  ;;  %2750 = vrcp.f32 %v1773_v47  ;;  %v1760_v18 = vsub.f32 1.0, %v1712_v34  ;;  %v1710_v54 = vpop.xlane.xlu0 %1709 }
 0x556   :  { %v2735_v21 = vpop.eup %2734  ;;  %v1819_v53 = vsel %vm1818_vm2, %v3837_v43, %v1817_v29  ;;  %v3885_v3 = vmul.f32 %v2733_v4, %v1740_v45  ;;  %2752 = vrcp.f32 %v1768_v2  ;;  %v1877_v43 = vand.u32 2147483648, %v3851_v56 }
 0x557   :  { %v1822_v42 = vsel %vm1820_vm3, %v1821_v32, %v1819_v53  ;;  %v1812_v36 = vsel %vm1811_vm4, %v3841_v44, %v1810_v8  ;;  %v3892_v37 = vmul.f32 %v2735_v21, %v1739_v27  ;;  %v1759_v44 = vsub.f32 1.0, %v1710_v54 }
 0x558   :  { %v2737_v46 = vpop.eup %2736  ;;  %1923 = vst.msk [vmem:[%s4050_s3 + $0x8] sm:$0xff] %vm1921_vm0, %v1822_v42  ;;  %v1815_v63 = vsel %vm1813_vm5, %v1814_v48, %v1812_v36  ;;  %2754 = vrsqrt.f32 %v3885_v3  ;;  %v1776_v58 = vmax.f32 %v1760_v18, 0.0  ;;  %v1828_v45 = vand.u32 2147483648, %v3868_v59 }
 0x559   :  { %v2739_v0 = vpop.eup %2738  ;;  %1922 = vst.msk [vmem:[%s4050_s3] sm:$0xff] %vm1921_vm0, %v1815_v63  ;;  %v1873_v28 = vmul.f32 %v2737_v46, %v3851_v56  ;;  %2756 = vrsqrt.f32 %v3892_v37  ;;  %v1775_v10 = vmax.f32 %v1759_v44, 0.0  ;;  %vm1888_vm14 = vcmp.eq.f32.partialorder %v3885_v3, inf }
 0x55a   :  { %v2741_v57 = vpop.eup %2740  ;;  %v1866_v49 = vmul.f32 %v2739_v0, %v3853_v7  ;;  %2758 = vrcp.f32 %v1767_v19  ;;  %v1891_v13 = vand.u32 2147483648, %v3885_v3  ;;  %vm1890_vm15 = vcmp.eq.f32.partialorder %v3885_v3, 0.0 }
 0x55b   :  { %v2743_v25 = vpop.eup %2742  ;;  %v1875_v33 = vsel %vm1874_vm6, %v3851_v56, %v1873_v28  ;;  %v3918_v31 = vmul.f32 %v2741_v57, %v3855_v20  ;;  %vm1881_vm1 = vcmp.eq.f32.partialorder %v3892_v37, inf  ;;  %v1884_v40 = vand.u32 2147483648, %v3892_v37 }
 0x55c   :  { %v2745_v61 = vpop.eup %2744  ;;  %v1878_v35 = vsel %vm1876_vm7, %v1877_v43, %v1875_v33  ;;  %v1868_v6 = vsel %vm1867_vm8, %v3853_v7, %v1866_v49  ;;  %v3924_v22 = vmul.f32 %v2743_v25, %v3858_v60  ;;  %v1835_v7 = vand.u32 2147483648, %v3865_v39 }
 0x55d   :  { %v2747_v50 = vpop.eup %2746  ;;  %1931 = vst.msk [vmem:[%s4050_s3 + $0x48] sm:$0xff] %vm1921_vm0, %v1878_v35  ;;  %v1871_v38 = vsel %vm1869_vm9, %v1870_v41, %v1868_v6  ;;  %v1831_v15 = vmul.f32 %v2745_v61, %v3865_v39  ;;  %2760 = vrsqrt.f32 %v3918_v31  ;;  %vm1883_vm2 = vcmp.eq.f32.partialorder %v3892_v37, 0.0 }
 0x55e   :  { %v2749_v56 = vpop.eup %2748  ;;  %1930 = vst.msk [vmem:[%s4050_s3 + $0x40] sm:$0xff] %vm1921_vm0, %v1871_v38  ;;  %v1824_v30 = vmul.f32 %v2747_v50, %v3868_v59  ;;  %2762 = vrsqrt.f32 %v3924_v22  ;;  %v1744_v1 = vmax.f32 %v1728_v51, 0.0  ;;  %vm1846_vm3 = vcmp.eq.f32.partialorder %v3918_v31, inf }
 0x55f   :  { %v1833_v9 = vsel %vm1832_vm10, %v3865_v39, %v1831_v15  ;;  %v2751_v27 = vpop.eup %2750  ;;  %v3948_v60 = vmul.f32 %v2749_v56, %v3860_v11  ;;  %2764 = vrcp.f32 %v1776_v58  ;;  %v1735_v11 = vmax.f32 %v1719_v5, 0.0 }
 0x560   :  { %v1836_v20 = vsel %vm1834_vm11, %v1835_v7, %v1833_v9  ;;  %v1826_v12 = vsel %vm1825_vm12, %v3868_v59, %v1824_v30  ;;  %v2753_v26 = vpop.eup %2752  ;;  %v3955_v17 = vmul.f32 %v2751_v27, %v3862_v55  ;;  %2766 = vrcp.f32 %v1775_v10  ;;  %v4145_v55 = vld [vmem:[#allocation12_spill] sm:$0xff] }
 0x561   :  { %1925 = vst.msk [vmem:[%s4050_s3 + $0x18] sm:$0xff] %vm1921_vm0, %v1836_v20  ;;  %v1829_v39 = vsel %vm1827_vm13, %v1828_v45, %v1826_v12  ;;  %2768 = vrsqrt.f32 %v3948_v60  ;;  %v1727_v14 = vsub.f32 1.0, %v4145_v55  ;;  %v3973_v52 = vmul.f32 %v2753_v26, %v1736_v62 }
 0x562   :  { %v2755_v16 = vpop.eup %2754  ;;  %1924 = vst.msk [vmem:[%s4050_s3 + $0x10] sm:$0xff] %vm1921_vm0, %v1829_v39  ;;  %2770 = vrsqrt.f32 %v3955_v17  ;;  %vm1848_vm4 = vcmp.eq.f32.partialorder %v3918_v31, 0.0  ;;  %vm1839_vm5 = vcmp.eq.f32.partialorder %v3924_v22, inf  ;;  %v1842_v36 = vand.u32 2147483648, %v3924_v22 }
 0x563   :  { %v2757_v59 = vpop.eup %2756  ;;  %v1887_v32 = vmul.f32 %v2755_v16, %v3885_v3  ;;  %2772 = vrsqrt.f32 %v3973_v52  ;;  %v1743_v21 = vmax.f32 %v1727_v14, 0.0  ;;  %vm1841_vm6 = vcmp.eq.f32.partialorder %v3924_v22, 0.0 }
 0x564   :  { %v1880_v23 = vmul.f32 %v2757_v59, %v3892_v37  ;;  %v2759_v29 = vpop.eup %2758  ;;  %vm1902_vm7 = vcmp.eq.f32.partialorder %v3948_v60, inf  ;;  %v1905_v41 = vand.u32 2147483648, %v3948_v60  ;;  %vm1904_vm8 = vcmp.eq.f32.partialorder %v3948_v60, 0.0 }
 0x565   :  { %v1889_v5 = vsel %vm1888_vm14, %v3885_v3, %v1887_v32  ;;  %v1790_v8 = vmul.f32 %v2759_v29, %v1735_v11  ;;  %v1849_v3 = vand.u32 2147483648, %v3918_v31  ;;  %vm1895_vm9 = vcmp.eq.f32.partialorder %v3955_v17, inf }
 0x566   :  { %v1892_v47 = vsel %vm1890_vm15, %v1891_v13, %v1889_v5  ;;  %v1882_v2 = vsel %vm1881_vm1, %v3892_v37, %v1880_v23  ;;  %v1898_v33 = vand.u32 2147483648, %v3955_v17  ;;  %vm1897_vm10 = vcmp.eq.f32.partialorder %v3955_v17, 0.0 }
 0x567   :  { %v2761_v34 = vpop.eup %2760  ;;  %1933 = vst.msk [vmem:[%s4050_s3 + $0x58] sm:$0xff] %vm1921_vm0, %v1892_v47  ;;  %v1885_v4 = vsel %vm1883_vm2, %v1884_v40, %v1882_v2  ;;  %2774 = vrsqrt.f32 %v1790_v8  ;;  %vm1860_vm11 = vcmp.eq.f32.partialorder %v3973_v52, inf  ;;  %vm1862_vm12 = vcmp.eq.f32.partialorder %v3973_v52, 0.0 }
 0x568   :  { %v2763_v48 = vpop.eup %2762  ;;  %1932 = vst.msk [vmem:[%s4050_s3 + $0x50] sm:$0xff] %vm1921_vm0, %v1885_v4  ;;  %v1845_v53 = vmul.f32 %v2761_v34, %v3918_v31  ;;  %vm1853_vm13 = vcmp.eq.f32.partialorder %v1790_v8, inf  ;;  %v1856_v56 = vand.u32 2147483648, %v1790_v8  ;;  %vm1855_vm14 = vcmp.eq.f32.partialorder %v1790_v8, 0.0 }
 0x569   :  { %v1838_v18 = vmul.f32 %v2763_v48, %v3924_v22  ;;  %v2765_v54 = vpop.eup %2764 }
 0x56a   :  { %v1847_v42 = vsel %vm1846_vm3, %v3918_v31, %v1845_v53  ;;  %v2767_v37 = vpop.eup %2766  ;;  %v1808_v43 = vmul.f32 %v2765_v54, %v1744_v1 }
 0x56b   :  { %v1850_v46 = vsel %vm1848_vm4, %v1849_v3, %v1847_v42  ;;  %v1840_v63 = vsel %vm1839_vm5, %v3924_v22, %v1838_v18  ;;  %v2769_v0 = vpop.eup %2768  ;;  %v1806_v44 = vmul.f32 %v2767_v37, %v1743_v21  ;;  %v1863_v22 = vand.u32 2147483648, %v3973_v52 }
 0x56c   :  { %1927 = vst.msk [vmem:[%s4050_s3 + $0x28] sm:$0xff] %vm1921_vm0, %v1850_v46  ;;  %v1843_v28 = vsel %vm1841_vm6, %v1842_v36, %v1840_v63  ;;  %v2771_v57 = vpop.eup %2770  ;;  %v1901_v49 = vmul.f32 %v2769_v0, %v3948_v60  ;;  %2776 = vrsqrt.f32 %v1808_v43  ;;  %vm1916_vm15 = vcmp.eq.f32.partialorder %v1808_v43, inf }
 0x56d   :  { %1926 = vst.msk [vmem:[%s4050_s3 + $0x20] sm:$0xff] %vm1921_vm0, %v1843_v28  ;;  %v1894_v19 = vmul.f32 %v2771_v57, %v3955_v17  ;;  %2778 = vrsqrt.f32 %v1806_v44  ;;  %v2773_v31 = vpop.eup %2772  ;;  %v1919_v20 = vand.u32 2147483648, %v1808_v43  ;;  %vm1918_vm1 = vcmp.eq.f32.partialorder %v1808_v43, 0.0 }
 0x56e   :  { %v1903_v25 = vsel %vm1902_vm7, %v3948_v60, %v1901_v49  ;;  %v1859_v6 = vmul.f32 %v2773_v31, %v3973_v52  ;;  %vm1909_vm2 = vcmp.eq.f32.partialorder %v1806_v44, inf  ;;  %v1912_v26 = vand.u32 2147483648, %v1806_v44 }
 0x56f   :  { %v1906_v58 = vsel %vm1904_vm8, %v1905_v41, %v1903_v25  ;;  %v1896_v61 = vsel %vm1895_vm9, %v3955_v17, %v1894_v19  ;;  %vm1911_vm3 = vcmp.eq.f32.partialorder %v1806_v44, 0.0 }
 0x570   :  { %1935 = vst.msk [vmem:[%s4050_s3 + $0x68] sm:$0xff] %vm1921_vm0, %v1906_v58  ;;  %v1899_v35 = vsel %vm1897_vm10, %v1898_v33, %v1896_v61  ;;  %v1861_v38 = vsel %vm1860_vm11, %v3973_v52, %v1859_v6 }
 0x571   :  { %1934 = vst.msk [vmem:[%s4050_s3 + $0x60] sm:$0xff] %vm1921_vm0, %v1899_v35  ;;  %v2775_v50 = vpop.eup %2774  ;;  %v1864_v15 = vsel %vm1862_vm12, %v1863_v22, %v1861_v38 }
 0x572   :  { %v1852_v10 = vmul.f32 %v2775_v50, %v1790_v8  ;;  %1929 = vst.msk [vmem:[%s4050_s3 + $0x38] sm:$0xff] %vm1921_vm0, %v1864_v15 }
 0x574   :  { %v1854_v7 = vsel %vm1853_vm13, %v1790_v8, %v1852_v10 }
 0x575   :  { %v1857_v9 = vsel %vm1855_vm14, %v1856_v56, %v1854_v7 }
 0x576   :  { %v2777_v30 = vpop.eup %2776  ;;  %1928 = vst.msk [vmem:[%s4050_s3 + $0x30] sm:$0xff] %vm1921_vm0, %v1857_v9 }
 0x577   :  { %v2779_v45 = vpop.eup %2778  ;;  %v1915_v27 = vmul.f32 %v2777_v30, %v1808_v43 }
 0x578   :  { %v1908_v12 = vmul.f32 %v2779_v45, %v1806_v44 }
 0x579   :  { %v1917_v60 = vsel %vm1916_vm15, %v1808_v43, %v1915_v27 }
 0x57a   :  { %v1920_v39 = vsel %vm1918_vm1, %v1919_v20, %v1917_v60  ;;  %v1910_v17 = vsel %vm1909_vm2, %v1806_v44, %v1908_v12 }
 0x57b   :  { %1937 = vst.msk [vmem:[%s4050_s3 + $0x78] sm:$0xff] %vm1921_vm0, %v1920_v39  ;;  %v1913_v16 = vsel %vm1911_vm3, %v1912_v26, %v1910_v17 }
 0x57c   :  { %1936 = vst.msk [vmem:[%s4050_s3 + $0x70] sm:$0xff] %vm1921_vm0, %v1913_v16 }
 0x57d   :  { %1962 = vsyncpa [#allocation3], 1 }
 0x57e   :  { %1963 = vsyncpa [#allocation5], 1 }

</bundles_post_ra>
